<compile_context>
chip_gen: v5e
topology: v5e:2x2
jax: 0.10.0
libtpu: 0.0.40
codegen_flags: <defaults>
</compile_context>

<pallas_src>
import jax
import jax.numpy as jnp
from jax import lax
from jax.experimental import pallas as pl
from jax.experimental.pallas import tpu as pltpu

# ---- small, module-consistent shapes ----
VOCAB = 512          # vocab_size (kept small for the synthetic example)
EMBED = 32           # embed_size
HEADS = 4            # heads
HEAD_DIM = EMBED // HEADS
NUM_LAYERS = 2       # num_layers
BATCH = 2            # N
SEQ = 8              # query_len
FFN_HIDDEN = 4 * EMBED
LN_EPS = 1e-5


# ----------------------------------------------------------------------------
# Fused forward kernel: one grid step = one batch element, full forward pass.
# ----------------------------------------------------------------------------

def _gpt2_forward_kernel(x_ref, bias_ref,
                         wqkv_ref, wo_ref, bo_ref,
                         ln1g_ref, ln1b_ref,
                         w1_ref, b1_ref, w2_ref, b2_ref,
                         ln2g_ref, ln2b_ref,
                         fcw_ref, fcb_ref,
                         out_ref):
    x = x_ref[0]                                   # (S, E) activations
    bias = bias_ref[0]                             # (S, S) additive mask bias
    scale = 1.0 / (EMBED ** 0.5)                   # energy / embed_size ** 0.5, as in module

    def layer_norm(y, gamma, beta):
        mean = jnp.mean(y, axis=-1, keepdims=True)
        var = jnp.mean((y - mean) ** 2, axis=-1, keepdims=True)   # biased var (torch LN)
        return (y - mean) * lax.rsqrt(var + LN_EPS) * gamma + beta

    for l in range(NUM_LAYERS):                    # static unroll (NUM_LAYERS = 2)
        # ---- multi-head attention ----
        # Packed Q/K/V: block-diagonal weights (shared per-head (D,D) weight, pre-expanded
        # and packed in the wrapper) -> a single (S,E)@(E,3E) matmul.
        qkv = jnp.dot(x, wqkv_ref[l], preferred_element_type=jnp.float32)   # (S, 3E)

        wo = wo_ref[l]                                                      # (E, E), (in,out)
        attn_out = jnp.zeros((SEQ, EMBED), jnp.float32)
        for h in range(HEADS):                     # static unroll over tiny (8x8) head tiles
            q_h = qkv[:, h * HEAD_DIM:(h + 1) * HEAD_DIM]                   # (S, D)
            k_h = qkv[:, EMBED + h * HEAD_DIM:EMBED + (h + 1) * HEAD_DIM]   # (S, D)
            v_h = qkv[:, 2 * EMBED + h * HEAD_DIM:
                         2 * EMBED + (h + 1) * HEAD_DIM]                    # (S, D)

            # energy_h = q_h @ k_h^T (no in-kernel transpose), mask as additive bias,
            # then scale, then row-softmax — all per head, no concatenation.
            e_h = lax.dot_general(q_h, k_h, (((1,), (1,)), ((), ())),
                                  preferred_element_type=jnp.float32)       # (S, S)
            logits = (e_h + bias) * scale
            m = jnp.max(logits, axis=-1, keepdims=True)
            p = jnp.exp(logits - m)
            denom = jnp.sum(p, axis=-1, keepdims=True)
            a_h = p * pl.reciprocal(denom, approx=True)                     # softmax(dim=-1)

            # Output projection distributed over heads: A_h @ (V_h @ Wo[hD:(h+1)D, :]).
            vo_h = jnp.dot(v_h, wo[h * HEAD_DIM:(h + 1) * HEAD_DIM, :],
                           preferred_element_type=jnp.float32)              # (S, E)
            attn_out = attn_out + jnp.dot(a_h, vo_h,
                                          preferred_element_type=jnp.float32)
        attn_out = attn_out + bo_ref[l]                                     # fc_out bias

        # ---- residual + LayerNorm 1 ----
        x = layer_norm(attn_out + x, ln1g_ref[l], ln1b_ref[l])

        # ---- feed-forward ----
        h1 = jnp.dot(x, w1_ref[l], preferred_element_type=jnp.float32) + b1_ref[l]
        h1 = jnp.maximum(h1, 0.0)                                           # ReLU
        ff = jnp.dot(h1, w2_ref[l], preferred_element_type=jnp.float32) + b2_ref[l]

        # ---- residual + LayerNorm 2 ----
        x = layer_norm(ff + x, ln2g_ref[l], ln2b_ref[l])

    # ---- vocab projection (lane-dense V=512 output, the only HBM store) ----
    out_ref[0] = jnp.dot(x, fcw_ref[...], preferred_element_type=jnp.float32) + fcb_ref[...]


# ----------------------------------------------------------------------------
# pallas_call wrapper
# ----------------------------------------------------------------------------

_WEIGHT_ORDER = ("wqkv", "wo", "bo", "ln1_g", "ln1_b",
                 "w1", "b1", "w2", "b2", "ln2_g", "ln2_b", "fc_w", "fc_b")


def gpt2_forward_pallas(params, x_emb, mask_bias):
    n, s, e = x_emb.shape
    v = params["fc_w"].shape[1]

    def full_spec(arr):
        nd = arr.ndim
        return pl.BlockSpec(arr.shape, lambda i, _nd=nd: (0,) * _nd)

    weights = [params[name] for name in _WEIGHT_ORDER]

    # TODO(synk): at real GPT-2 sizes, tile the vocab / FFN-hidden dims and set
    # vmem_limit_bytes per generation instead of whole-weight-in-VMEM specs.
    return pl.pallas_call(
        _gpt2_forward_kernel,
        out_shape=jax.ShapeDtypeStruct((n, s, v), jnp.float32),
        grid=(n,),
        in_specs=[pl.BlockSpec((1, s, e), lambda i: (i, 0, 0)),
                  pl.BlockSpec((1, s, s), lambda i: (i, 0, 0))]
                 + [full_spec(w) for w in weights],
        out_specs=pl.BlockSpec((1, s, v), lambda i: (i, 0, 0)),
        compiler_params=pltpu.CompilerParams(dimension_semantics=("parallel",)),
    )(x_emb, mask_bias, *weights)


# ----------------------------------------------------------------------------
# Parameter construction (deterministic), with one-time pre-transpose / packing
# ----------------------------------------------------------------------------

def _block_diag(w_t):
    # Shared per-head weight (D,D), already (in,out); expand to block-diagonal (E,E)
    # so the per-head Linear becomes part of a single (S,E)@(E,*) matmul. Exact:
    # off-block weights are 0.
    return jnp.kron(jnp.eye(HEADS, dtype=w_t.dtype), w_t)


def init_params(key):
    keys = iter(jax.random.split(key, 8 + NUM_LAYERS * 16))
    nk = lambda: next(keys)
    rnd = lambda shape, scale=0.02: jax.random.normal(nk(), shape, jnp.float32) * scale

    embedding = rnd((VOCAB, EMBED), 1.0)

    wqkv, wo, bo = [], [], []
    ln1_g, ln1_b, ln2_g, ln2_b = [], [], [], []
    w1, b1, w2, b2 = [], [], [], []
    for _ in range(NUM_LAYERS):
        # PyTorch-style (out_features, in_features) draws, pre-transposed once to (in, out).
        wq = _block_diag(rnd((HEAD_DIM, HEAD_DIM)).T)         # (E, E) block-diagonal
        wk = _block_diag(rnd((HEAD_DIM, HEAD_DIM)).T)
        wv = _block_diag(rnd((HEAD_DIM, HEAD_DIM)).T)
        wqkv.append(jnp.concatenate([wq, wk, wv], axis=1))    # (E, 3E) packed QKV
        wo.append(rnd((EMBED, EMBED)).T)                      # (E, E)
        bo.append(rnd((1, EMBED)))
        ln1_g.append(jnp.ones((1, EMBED), jnp.float32))
        ln1_b.append(jnp.zeros((1, EMBED), jnp.float32))
        w1.append(rnd((FFN_HIDDEN, EMBED)).T)                 # (E, 4E)
        b1.append(rnd((1, FFN_HIDDEN)))
        w2.append(rnd((EMBED, FFN_HIDDEN)).T)                 # (4E, E)
        b2.append(rnd((1, EMBED)))
        ln2_g.append(jnp.ones((1, EMBED), jnp.float32))
        ln2_b.append(jnp.zeros((1, EMBED), jnp.float32))

    stack = lambda xs: jnp.stack(xs, axis=0)                  # stack across layers -> (L, ...)
    return {
        "embedding": embedding,
        "wqkv": stack(wqkv), "wo": stack(wo), "bo": stack(bo),
        "ln1_g": stack(ln1_g), "ln1_b": stack(ln1_b),
        "w1": stack(w1), "b1": stack(b1), "w2": stack(w2), "b2": stack(b2),
        "ln2_g": stack(ln2_g), "ln2_b": stack(ln2_b),
        "fc_w": rnd((VOCAB, EMBED)).T,                        # (E, V), pre-transposed
        "fc_b": rnd((1, VOCAB)),
    }


@jax.jit
def gpt2_forward(params, tokens, mask):
    # Embedding gather (glue, plain JAX).
    x = jnp.take(params["embedding"], tokens, axis=0)                       # (N, S, E)
    # Additive mask bias (mask==0 -> -1e20), computed once in the wrapper.
    mask_bias = jnp.where(mask[:, 0, :, :] == 0,
                          jnp.float32(-1e20), jnp.float32(0.0))             # (N, S, S)
    return gpt2_forward_pallas(params, x, mask_bias)                        # (N, S, VOCAB)


if __name__ == "__main__":
    key = jax.random.PRNGKey(0)
    pkey, tkey = jax.random.split(key)
    params = init_params(pkey)

    tokens = jax.random.randint(tkey, (BATCH, SEQ), 0, VOCAB, dtype=jnp.int32)
    mask = jnp.ones((BATCH, 1, SEQ, SEQ), jnp.float32)   # same all-ones mask as the script

    logits = gpt2_forward(params, tokens, mask)
    jax.block_until_ready(logits)
    assert logits.shape == (BATCH, SEQ, VOCAB) and logits.dtype == jnp.float32
    print("KERNEL_OK")
</pallas_src>

<mosaic_0001>
module attributes {stable_mosaic.version = 11 : i64} {
  func.func @_gpt2_forward_kernel(%arg0: i32, %arg1: memref<1x8x32xf32, #tpu.memory_space<vmem>>, %arg2: memref<1x8x8xf32, #tpu.memory_space<vmem>>, %arg3: memref<2x32x96xf32, #tpu.memory_space<vmem>>, %arg4: memref<2x32x32xf32, #tpu.memory_space<vmem>>, %arg5: memref<2x1x32xf32, #tpu.memory_space<vmem>>, %arg6: memref<2x1x32xf32, #tpu.memory_space<vmem>>, %arg7: memref<2x1x32xf32, #tpu.memory_space<vmem>>, %arg8: memref<2x32x128xf32, #tpu.memory_space<vmem>>, %arg9: memref<2x1x128xf32, #tpu.memory_space<vmem>>, %arg10: memref<2x128x32xf32, #tpu.memory_space<vmem>>, %arg11: memref<2x1x32xf32, #tpu.memory_space<vmem>>, %arg12: memref<2x1x32xf32, #tpu.memory_space<vmem>>, %arg13: memref<2x1x32xf32, #tpu.memory_space<vmem>>, %arg14: memref<32x512xf32, #tpu.memory_space<vmem>>, %arg15: memref<1x512xf32, #tpu.memory_space<vmem>>, %arg16: memref<1x8x512xf32, #tpu.memory_space<vmem>>) attributes {dimension_semantics = [#tpu.dimension_semantics<parallel>], iteration_bounds = array<i64: 2>, scalar_prefetch = 0 : i64, scratch_operands = 0 : i64, tpu.core_type = #tpu.core_type<tc>, window_params = [{transform_indices = @transform_0, window_bounds = array<i64: 1, 8, 32>}, {transform_indices = @transform_1, window_bounds = array<i64: 1, 8, 8>}, {pipeline_mode = #tpu.pipeline_mode<synchronous>, transform_indices = @transform_2, window_bounds = array<i64: 2, 32, 96>}, {pipeline_mode = #tpu.pipeline_mode<synchronous>, transform_indices = @transform_3, window_bounds = array<i64: 2, 32, 32>}, {pipeline_mode = #tpu.pipeline_mode<synchronous>, transform_indices = @transform_4, window_bounds = array<i64: 2, 1, 32>}, {pipeline_mode = #tpu.pipeline_mode<synchronous>, transform_indices = @transform_5, window_bounds = array<i64: 2, 1, 32>}, {pipeline_mode = #tpu.pipeline_mode<synchronous>, transform_indices = @transform_6, window_bounds = array<i64: 2, 1, 32>}, {pipeline_mode = #tpu.pipeline_mode<synchronous>, transform_indices = @transform_7, window_bounds = array<i64: 2, 32, 128>}, {pipeline_mode = #tpu.pipeline_mode<synchronous>, transform_indices = @transform_8, window_bounds = array<i64: 2, 1, 128>}, {pipeline_mode = #tpu.pipeline_mode<synchronous>, transform_indices = @transform_9, window_bounds = array<i64: 2, 128, 32>}, {pipeline_mode = #tpu.pipeline_mode<synchronous>, transform_indices = @transform_10, window_bounds = array<i64: 2, 1, 32>}, {pipeline_mode = #tpu.pipeline_mode<synchronous>, transform_indices = @transform_11, window_bounds = array<i64: 2, 1, 32>}, {pipeline_mode = #tpu.pipeline_mode<synchronous>, transform_indices = @transform_12, window_bounds = array<i64: 2, 1, 32>}, {pipeline_mode = #tpu.pipeline_mode<synchronous>, transform_indices = @transform_13, window_bounds = array<i64: 32, 512>}, {pipeline_mode = #tpu.pipeline_mode<synchronous>, transform_indices = @transform_14, window_bounds = array<i64: 1, 512>}, {transform_indices = @transform_15, window_bounds = array<i64: 1, 8, 512>}]} {
    %c0 = arith.constant 0 : index
    %c0_0 = arith.constant 0 : index
    %c0_1 = arith.constant 0 : index
    %0 = vector.load %arg1[%c0, %c0_0, %c0_1] : memref<1x8x32xf32, #tpu.memory_space<vmem>>, vector<1x8x32xf32>
    %1 = vector.shape_cast %0 : vector<1x8x32xf32> to vector<8x32xf32>
    %c0_2 = arith.constant 0 : index
    %c0_3 = arith.constant 0 : index
    %c0_4 = arith.constant 0 : index
    %2 = vector.load %arg2[%c0_2, %c0_3, %c0_4] : memref<1x8x8xf32, #tpu.memory_space<vmem>>, vector<1x8x8xf32>
    %3 = vector.shape_cast %2 : vector<1x8x8xf32> to vector<8x8xf32>
    %c0_5 = arith.constant 0 : index
    %c0_6 = arith.constant 0 : index
    %c0_7 = arith.constant 0 : index
    %4 = vector.load %arg3[%c0_5, %c0_6, %c0_7] : memref<2x32x96xf32, #tpu.memory_space<vmem>>, vector<1x32x96xf32>
    %5 = vector.shape_cast %4 : vector<1x32x96xf32> to vector<32x96xf32>
    %cst = arith.constant dense<0.000000e+00> : vector<8x96xf32>
    %6 = tpu.matmul %1, %5, %cst {dimension_numbers = #tpu.dot_dimension_numbers<[1], [0], [0], [1], [0, 0, 1, 1], [], []>} : vector<8x32xf32>, vector<32x96xf32>, vector<8x96xf32> -> vector<8x96xf32>
    %c0_8 = arith.constant 0 : index
    %c0_9 = arith.constant 0 : index
    %c0_10 = arith.constant 0 : index
    %7 = vector.load %arg4[%c0_8, %c0_9, %c0_10] : memref<2x32x32xf32, #tpu.memory_space<vmem>>, vector<1x32x32xf32>
    %8 = vector.shape_cast %7 : vector<1x32x32xf32> to vector<32x32xf32>
    %cst_11 = arith.constant 0.000000e+00 : f32
    %9 = vector.broadcast %cst_11 : f32 to vector<8x32xf32>
    %10 = vector.extract_strided_slice %6 {offsets = [0, 0], sizes = [8, 8], strides = [1, 1]} : vector<8x96xf32> to vector<8x8xf32>
    %11 = vector.extract_strided_slice %6 {offsets = [0, 32], sizes = [8, 8], strides = [1, 1]} : vector<8x96xf32> to vector<8x8xf32>
    %12 = vector.extract_strided_slice %6 {offsets = [0, 64], sizes = [8, 8], strides = [1, 1]} : vector<8x96xf32> to vector<8x8xf32>
    %cst_12 = arith.constant dense<0.000000e+00> : vector<8x8xf32>
    %13 = tpu.matmul %10, %11, %cst_12 {dimension_numbers = #tpu.dot_dimension_numbers<[1], [1], [0], [0], [0, 0, 1, 0], [], []>} : vector<8x8xf32>, vector<8x8xf32>, vector<8x8xf32> -> vector<8x8xf32>
    %14 = arith.addf %13, %3 : vector<8x8xf32>
    %cst_13 = arith.constant 0.176776692 : f32
    %15 = vector.broadcast %cst_13 : f32 to vector<8x8xf32>
    %16 = arith.mulf %14, %15 : vector<8x8xf32>
    %cst_14 = arith.constant dense<0xFF800000> : vector<8xf32>
    %17 = vector.multi_reduction <maximumf>, %16, %cst_14 [1] : vector<8x8xf32> to vector<8xf32>
    %18 = vector.shape_cast %17 : vector<8xf32> to vector<8x1xf32>
    %19 = vector.broadcast %18 : vector<8x1xf32> to vector<8x8xf32>
    %20 = arith.subf %16, %19 : vector<8x8xf32>
    %21 = math.exp %20 : vector<8x8xf32>
    %cst_15 = arith.constant dense<0.000000e+00> : vector<8xf32>
    %22 = vector.multi_reduction <add>, %21, %cst_15 [1] : vector<8x8xf32> to vector<8xf32>
    %23 = vector.shape_cast %22 : vector<8xf32> to vector<8x1xf32>
    %24 = tpu.reciprocal %23 {approx = true} : vector<8x1xf32> -> vector<8x1xf32>
    %25 = vector.broadcast %24 : vector<8x1xf32> to vector<8x8xf32>
    %26 = arith.mulf %21, %25 : vector<8x8xf32>
    %27 = vector.extract_strided_slice %8 {offsets = [0, 0], sizes = [8, 32], strides = [1, 1]} : vector<32x32xf32> to vector<8x32xf32>
    %cst_16 = arith.constant dense<0.000000e+00> : vector<8x32xf32>
    %28 = tpu.matmul %12, %27, %cst_16 {dimension_numbers = #tpu.dot_dimension_numbers<[1], [0], [0], [1], [0, 0, 1, 1], [], []>} : vector<8x8xf32>, vector<8x32xf32>, vector<8x32xf32> -> vector<8x32xf32>
    %cst_17 = arith.constant dense<0.000000e+00> : vector<8x32xf32>
    %29 = tpu.matmul %26, %28, %cst_17 {dimension_numbers = #tpu.dot_dimension_numbers<[1], [0], [0], [1], [0, 0, 1, 1], [], []>} : vector<8x8xf32>, vector<8x32xf32>, vector<8x32xf32> -> vector<8x32xf32>
    %30 = arith.addf %9, %29 : vector<8x32xf32>
    %31 = vector.extract_strided_slice %6 {offsets = [0, 8], sizes = [8, 8], strides = [1, 1]} : vector<8x96xf32> to vector<8x8xf32>
    %32 = vector.extract_strided_slice %6 {offsets = [0, 40], sizes = [8, 8], strides = [1, 1]} : vector<8x96xf32> to vector<8x8xf32>
    %33 = vector.extract_strided_slice %6 {offsets = [0, 72], sizes = [8, 8], strides = [1, 1]} : vector<8x96xf32> to vector<8x8xf32>
    %cst_18 = arith.constant dense<0.000000e+00> : vector<8x8xf32>
    %34 = tpu.matmul %31, %32, %cst_18 {dimension_numbers = #tpu.dot_dimension_numbers<[1], [1], [0], [0], [0, 0, 1, 0], [], []>} : vector<8x8xf32>, vector<8x8xf32>, vector<8x8xf32> -> vector<8x8xf32>
    %35 = arith.addf %34, %3 : vector<8x8xf32>
    %cst_19 = arith.constant 0.176776692 : f32
    %36 = vector.broadcast %cst_19 : f32 to vector<8x8xf32>
    %37 = arith.mulf %35, %36 : vector<8x8xf32>
    %cst_20 = arith.constant dense<0xFF800000> : vector<8xf32>
    %38 = vector.multi_reduction <maximumf>, %37, %cst_20 [1] : vector<8x8xf32> to vector<8xf32>
    %39 = vector.shape_cast %38 : vector<8xf32> to vector<8x1xf32>
    %40 = vector.broadcast %39 : vector<8x1xf32> to vector<8x8xf32>
    %41 = arith.subf %37, %40 : vector<8x8xf32>
    %42 = math.exp %41 : vector<8x8xf32>
    %cst_21 = arith.constant dense<0.000000e+00> : vector<8xf32>
    %43 = vector.multi_reduction <add>, %42, %cst_21 [1] : vector<8x8xf32> to vector<8xf32>
    %44 = vector.shape_cast %43 : vector<8xf32> to vector<8x1xf32>
    %45 = tpu.reciprocal %44 {approx = true} : vector<8x1xf32> -> vector<8x1xf32>
    %46 = vector.broadcast %45 : vector<8x1xf32> to vector<8x8xf32>
    %47 = arith.mulf %42, %46 : vector<8x8xf32>
    %48 = vector.extract_strided_slice %8 {offsets = [8, 0], sizes = [8, 32], strides = [1, 1]} : vector<32x32xf32> to vector<8x32xf32>
    %cst_22 = arith.constant dense<0.000000e+00> : vector<8x32xf32>
    %49 = tpu.matmul %33, %48, %cst_22 {dimension_numbers = #tpu.dot_dimension_numbers<[1], [0], [0], [1], [0, 0, 1, 1], [], []>} : vector<8x8xf32>, vector<8x32xf32>, vector<8x32xf32> -> vector<8x32xf32>
    %cst_23 = arith.constant dense<0.000000e+00> : vector<8x32xf32>
    %50 = tpu.matmul %47, %49, %cst_23 {dimension_numbers = #tpu.dot_dimension_numbers<[1], [0], [0], [1], [0, 0, 1, 1], [], []>} : vector<8x8xf32>, vector<8x32xf32>, vector<8x32xf32> -> vector<8x32xf32>
    %51 = arith.addf %30, %50 : vector<8x32xf32>
    %52 = vector.extract_strided_slice %6 {offsets = [0, 16], sizes = [8, 8], strides = [1, 1]} : vector<8x96xf32> to vector<8x8xf32>
    %53 = vector.extract_strided_slice %6 {offsets = [0, 48], sizes = [8, 8], strides = [1, 1]} : vector<8x96xf32> to vector<8x8xf32>
    %54 = vector.extract_strided_slice %6 {offsets = [0, 80], sizes = [8, 8], strides = [1, 1]} : vector<8x96xf32> to vector<8x8xf32>
    %cst_24 = arith.constant dense<0.000000e+00> : vector<8x8xf32>
    %55 = tpu.matmul %52, %53, %cst_24 {dimension_numbers = #tpu.dot_dimension_numbers<[1], [1], [0], [0], [0, 0, 1, 0], [], []>} : vector<8x8xf32>, vector<8x8xf32>, vector<8x8xf32> -> vector<8x8xf32>
    %56 = arith.addf %55, %3 : vector<8x8xf32>
    %cst_25 = arith.constant 0.176776692 : f32
    %57 = vector.broadcast %cst_25 : f32 to vector<8x8xf32>
    %58 = arith.mulf %56, %57 : vector<8x8xf32>
    %cst_26 = arith.constant dense<0xFF800000> : vector<8xf32>
    %59 = vector.multi_reduction <maximumf>, %58, %cst_26 [1] : vector<8x8xf32> to vector<8xf32>
    %60 = vector.shape_cast %59 : vector<8xf32> to vector<8x1xf32>
    %61 = vector.broadcast %60 : vector<8x1xf32> to vector<8x8xf32>
    %62 = arith.subf %58, %61 : vector<8x8xf32>
    %63 = math.exp %62 : vector<8x8xf32>
    %cst_27 = arith.constant dense<0.000000e+00> : vector<8xf32>
    %64 = vector.multi_reduction <add>, %63, %cst_27 [1] : vector<8x8xf32> to vector<8xf32>
    %65 = vector.shape_cast %64 : vector<8xf32> to vector<8x1xf32>
    %66 = tpu.reciprocal %65 {approx = true} : vector<8x1xf32> -> vector<8x1xf32>
    %67 = vector.broadcast %66 : vector<8x1xf32> to vector<8x8xf32>
    %68 = arith.mulf %63, %67 : vector<8x8xf32>
    %69 = vector.extract_strided_slice %8 {offsets = [16, 0], sizes = [8, 32], strides = [1, 1]} : vector<32x32xf32> to vector<8x32xf32>
    %cst_28 = arith.constant dense<0.000000e+00> : vector<8x32xf32>
    %70 = tpu.matmul %54, %69, %cst_28 {dimension_numbers = #tpu.dot_dimension_numbers<[1], [0], [0], [1], [0, 0, 1, 1], [], []>} : vector<8x8xf32>, vector<8x32xf32>, vector<8x32xf32> -> vector<8x32xf32>
    %cst_29 = arith.constant dense<0.000000e+00> : vector<8x32xf32>
    %71 = tpu.matmul %68, %70, %cst_29 {dimension_numbers = #tpu.dot_dimension_numbers<[1], [0], [0], [1], [0, 0, 1, 1], [], []>} : vector<8x8xf32>, vector<8x32xf32>, vector<8x32xf32> -> vector<8x32xf32>
    %72 = arith.addf %51, %71 : vector<8x32xf32>
    %73 = vector.extract_strided_slice %6 {offsets = [0, 24], sizes = [8, 8], strides = [1, 1]} : vector<8x96xf32> to vector<8x8xf32>
    %74 = vector.extract_strided_slice %6 {offsets = [0, 56], sizes = [8, 8], strides = [1, 1]} : vector<8x96xf32> to vector<8x8xf32>
    %75 = vector.extract_strided_slice %6 {offsets = [0, 88], sizes = [8, 8], strides = [1, 1]} : vector<8x96xf32> to vector<8x8xf32>
    %cst_30 = arith.constant dense<0.000000e+00> : vector<8x8xf32>
    %76 = tpu.matmul %73, %74, %cst_30 {dimension_numbers = #tpu.dot_dimension_numbers<[1], [1], [0], [0], [0, 0, 1, 0], [], []>} : vector<8x8xf32>, vector<8x8xf32>, vector<8x8xf32> -> vector<8x8xf32>
    %77 = arith.addf %76, %3 : vector<8x8xf32>
    %cst_31 = arith.constant 0.176776692 : f32
    %78 = vector.broadcast %cst_31 : f32 to vector<8x8xf32>
    %79 = arith.mulf %77, %78 : vector<8x8xf32>
    %cst_32 = arith.constant dense<0xFF800000> : vector<8xf32>
    %80 = vector.multi_reduction <maximumf>, %79, %cst_32 [1] : vector<8x8xf32> to vector<8xf32>
    %81 = vector.shape_cast %80 : vector<8xf32> to vector<8x1xf32>
    %82 = vector.broadcast %81 : vector<8x1xf32> to vector<8x8xf32>
    %83 = arith.subf %79, %82 : vector<8x8xf32>
    %84 = math.exp %83 : vector<8x8xf32>
    %cst_33 = arith.constant dense<0.000000e+00> : vector<8xf32>
    %85 = vector.multi_reduction <add>, %84, %cst_33 [1] : vector<8x8xf32> to vector<8xf32>
    %86 = vector.shape_cast %85 : vector<8xf32> to vector<8x1xf32>
    %87 = tpu.reciprocal %86 {approx = true} : vector<8x1xf32> -> vector<8x1xf32>
    %88 = vector.broadcast %87 : vector<8x1xf32> to vector<8x8xf32>
    %89 = arith.mulf %84, %88 : vector<8x8xf32>
    %90 = vector.extract_strided_slice %8 {offsets = [24, 0], sizes = [8, 32], strides = [1, 1]} : vector<32x32xf32> to vector<8x32xf32>
    %cst_34 = arith.constant dense<0.000000e+00> : vector<8x32xf32>
    %91 = tpu.matmul %75, %90, %cst_34 {dimension_numbers = #tpu.dot_dimension_numbers<[1], [0], [0], [1], [0, 0, 1, 1], [], []>} : vector<8x8xf32>, vector<8x32xf32>, vector<8x32xf32> -> vector<8x32xf32>
    %cst_35 = arith.constant dense<0.000000e+00> : vector<8x32xf32>
    %92 = tpu.matmul %89, %91, %cst_35 {dimension_numbers = #tpu.dot_dimension_numbers<[1], [0], [0], [1], [0, 0, 1, 1], [], []>} : vector<8x8xf32>, vector<8x32xf32>, vector<8x32xf32> -> vector<8x32xf32>
    %93 = arith.addf %72, %92 : vector<8x32xf32>
    %c0_36 = arith.constant 0 : index
    %c0_37 = arith.constant 0 : index
    %c0_38 = arith.constant 0 : index
    %94 = vector.load %arg5[%c0_36, %c0_37, %c0_38] : memref<2x1x32xf32, #tpu.memory_space<vmem>>, vector<1x1x32xf32>
    %95 = vector.shape_cast %94 : vector<1x1x32xf32> to vector<1x32xf32>
    %96 = vector.broadcast %95 : vector<1x32xf32> to vector<8x32xf32>
    %97 = arith.addf %93, %96 : vector<8x32xf32>
    %98 = arith.addf %97, %1 : vector<8x32xf32>
    %c0_39 = arith.constant 0 : index
    %c0_40 = arith.constant 0 : index
    %c0_41 = arith.constant 0 : index
    %99 = vector.load %arg6[%c0_39, %c0_40, %c0_41] : memref<2x1x32xf32, #tpu.memory_space<vmem>>, vector<1x1x32xf32>
    %100 = vector.shape_cast %99 : vector<1x1x32xf32> to vector<1x32xf32>
    %c0_42 = arith.constant 0 : index
    %c0_43 = arith.constant 0 : index
    %c0_44 = arith.constant 0 : index
    %101 = vector.load %arg7[%c0_42, %c0_43, %c0_44] : memref<2x1x32xf32, #tpu.memory_space<vmem>>, vector<1x1x32xf32>
    %102 = vector.shape_cast %101 : vector<1x1x32xf32> to vector<1x32xf32>
    %cst_45 = arith.constant dense<0.000000e+00> : vector<8xf32>
    %103 = vector.multi_reduction <add>, %98, %cst_45 [1] : vector<8x32xf32> to vector<8xf32>
    %104 = vector.shape_cast %103 : vector<8xf32> to vector<8x1xf32>
    %cst_46 = arith.constant 3.200000e+01 : f32
    %105 = vector.broadcast %cst_46 : f32 to vector<8x1xf32>
    %106 = arith.divf %104, %105 : vector<8x1xf32>
    %107 = vector.broadcast %106 : vector<8x1xf32> to vector<8x32xf32>
    %108 = arith.subf %98, %107 : vector<8x32xf32>
    %109 = arith.mulf %108, %108 : vector<8x32xf32>
    %cst_47 = arith.constant dense<0.000000e+00> : vector<8xf32>
    %110 = vector.multi_reduction <add>, %109, %cst_47 [1] : vector<8x32xf32> to vector<8xf32>
    %111 = vector.shape_cast %110 : vector<8xf32> to vector<8x1xf32>
    %cst_48 = arith.constant 3.200000e+01 : f32
    %112 = vector.broadcast %cst_48 : f32 to vector<8x1xf32>
    %113 = arith.divf %111, %112 : vector<8x1xf32>
    %114 = vector.broadcast %106 : vector<8x1xf32> to vector<8x32xf32>
    %115 = arith.subf %98, %114 : vector<8x32xf32>
    %cst_49 = arith.constant 9.99999974E-6 : f32
    %116 = vector.broadcast %cst_49 : f32 to vector<8x1xf32>
    %117 = arith.addf %113, %116 : vector<8x1xf32>
    %118 = math.rsqrt %117 : vector<8x1xf32>
    %119 = vector.broadcast %118 : vector<8x1xf32> to vector<8x32xf32>
    %120 = arith.mulf %115, %119 : vector<8x32xf32>
    %121 = vector.broadcast %100 : vector<1x32xf32> to vector<8x32xf32>
    %122 = arith.mulf %120, %121 : vector<8x32xf32>
    %123 = vector.broadcast %102 : vector<1x32xf32> to vector<8x32xf32>
    %124 = arith.addf %122, %123 : vector<8x32xf32>
    %c0_50 = arith.constant 0 : index
    %c0_51 = arith.constant 0 : index
    %c0_52 = arith.constant 0 : index
    %125 = vector.load %arg8[%c0_50, %c0_51, %c0_52] : memref<2x32x128xf32, #tpu.memory_space<vmem>>, vector<1x32x128xf32>
    %126 = vector.shape_cast %125 : vector<1x32x128xf32> to vector<32x128xf32>
    %cst_53 = arith.constant dense<0.000000e+00> : vector<8x128xf32>
    %127 = tpu.matmul %124, %126, %cst_53 {dimension_numbers = #tpu.dot_dimension_numbers<[1], [0], [0], [1], [0, 0, 1, 1], [], []>} : vector<8x32xf32>, vector<32x128xf32>, vector<8x128xf32> -> vector<8x128xf32>
    %c0_54 = arith.constant 0 : index
    %c0_55 = arith.constant 0 : index
    %c0_56 = arith.constant 0 : index
    %128 = vector.load %arg9[%c0_54, %c0_55, %c0_56] : memref<2x1x128xf32, #tpu.memory_space<vmem>>, vector<1x1x128xf32>
    %129 = vector.shape_cast %128 : vector<1x1x128xf32> to vector<1x128xf32>
    %130 = vector.broadcast %129 : vector<1x128xf32> to vector<8x128xf32>
    %131 = arith.addf %127, %130 : vector<8x128xf32>
    %cst_57 = arith.constant 0.000000e+00 : f32
    %132 = vector.broadcast %cst_57 : f32 to vector<8x128xf32>
    %133 = arith.maximumf %131, %132 : vector<8x128xf32>
    %c0_58 = arith.constant 0 : index
    %c0_59 = arith.constant 0 : index
    %c0_60 = arith.constant 0 : index
    %134 = vector.load %arg10[%c0_58, %c0_59, %c0_60] : memref<2x128x32xf32, #tpu.memory_space<vmem>>, vector<1x128x32xf32>
    %135 = vector.shape_cast %134 : vector<1x128x32xf32> to vector<128x32xf32>
    %cst_61 = arith.constant dense<0.000000e+00> : vector<8x32xf32>
    %136 = tpu.matmul %133, %135, %cst_61 {dimension_numbers = #tpu.dot_dimension_numbers<[1], [0], [0], [1], [0, 0, 1, 1], [], []>} : vector<8x128xf32>, vector<128x32xf32>, vector<8x32xf32> -> vector<8x32xf32>
    %c0_62 = arith.constant 0 : index
    %c0_63 = arith.constant 0 : index
    %c0_64 = arith.constant 0 : index
    %137 = vector.load %arg11[%c0_62, %c0_63, %c0_64] : memref<2x1x32xf32, #tpu.memory_space<vmem>>, vector<1x1x32xf32>
    %138 = vector.shape_cast %137 : vector<1x1x32xf32> to vector<1x32xf32>
    %139 = vector.broadcast %138 : vector<1x32xf32> to vector<8x32xf32>
    %140 = arith.addf %136, %139 : vector<8x32xf32>
    %141 = arith.addf %140, %124 : vector<8x32xf32>
    %c0_65 = arith.constant 0 : index
    %c0_66 = arith.constant 0 : index
    %c0_67 = arith.constant 0 : index
    %142 = vector.load %arg12[%c0_65, %c0_66, %c0_67] : memref<2x1x32xf32, #tpu.memory_space<vmem>>, vector<1x1x32xf32>
    %143 = vector.shape_cast %142 : vector<1x1x32xf32> to vector<1x32xf32>
    %c0_68 = arith.constant 0 : index
    %c0_69 = arith.constant 0 : index
    %c0_70 = arith.constant 0 : index
    %144 = vector.load %arg13[%c0_68, %c0_69, %c0_70] : memref<2x1x32xf32, #tpu.memory_space<vmem>>, vector<1x1x32xf32>
    %145 = vector.shape_cast %144 : vector<1x1x32xf32> to vector<1x32xf32>
    %cst_71 = arith.constant dense<0.000000e+00> : vector<8xf32>
    %146 = vector.multi_reduction <add>, %141, %cst_71 [1] : vector<8x32xf32> to vector<8xf32>
    %147 = vector.shape_cast %146 : vector<8xf32> to vector<8x1xf32>
    %cst_72 = arith.constant 3.200000e+01 : f32
    %148 = vector.broadcast %cst_72 : f32 to vector<8x1xf32>
    %149 = arith.divf %147, %148 : vector<8x1xf32>
    %150 = vector.broadcast %149 : vector<8x1xf32> to vector<8x32xf32>
    %151 = arith.subf %141, %150 : vector<8x32xf32>
    %152 = arith.mulf %151, %151 : vector<8x32xf32>
    %cst_73 = arith.constant dense<0.000000e+00> : vector<8xf32>
    %153 = vector.multi_reduction <add>, %152, %cst_73 [1] : vector<8x32xf32> to vector<8xf32>
    %154 = vector.shape_cast %153 : vector<8xf32> to vector<8x1xf32>
    %cst_74 = arith.constant 3.200000e+01 : f32
    %155 = vector.broadcast %cst_74 : f32 to vector<8x1xf32>
    %156 = arith.divf %154, %155 : vector<8x1xf32>
    %157 = vector.broadcast %149 : vector<8x1xf32> to vector<8x32xf32>
    %158 = arith.subf %141, %157 : vector<8x32xf32>
    %cst_75 = arith.constant 9.99999974E-6 : f32
    %159 = vector.broadcast %cst_75 : f32 to vector<8x1xf32>
    %160 = arith.addf %156, %159 : vector<8x1xf32>
    %161 = math.rsqrt %160 : vector<8x1xf32>
    %162 = vector.broadcast %161 : vector<8x1xf32> to vector<8x32xf32>
    %163 = arith.mulf %158, %162 : vector<8x32xf32>
    %164 = vector.broadcast %143 : vector<1x32xf32> to vector<8x32xf32>
    %165 = arith.mulf %163, %164 : vector<8x32xf32>
    %166 = vector.broadcast %145 : vector<1x32xf32> to vector<8x32xf32>
    %167 = arith.addf %165, %166 : vector<8x32xf32>
    %c1 = arith.constant 1 : index
    %c0_76 = arith.constant 0 : index
    %c0_77 = arith.constant 0 : index
    %168 = vector.load %arg3[%c1, %c0_76, %c0_77] : memref<2x32x96xf32, #tpu.memory_space<vmem>>, vector<1x32x96xf32>
    %169 = vector.shape_cast %168 : vector<1x32x96xf32> to vector<32x96xf32>
    %cst_78 = arith.constant dense<0.000000e+00> : vector<8x96xf32>
    %170 = tpu.matmul %167, %169, %cst_78 {dimension_numbers = #tpu.dot_dimension_numbers<[1], [0], [0], [1], [0, 0, 1, 1], [], []>} : vector<8x32xf32>, vector<32x96xf32>, vector<8x96xf32> -> vector<8x96xf32>
    %c1_79 = arith.constant 1 : index
    %c0_80 = arith.constant 0 : index
    %c0_81 = arith.constant 0 : index
    %171 = vector.load %arg4[%c1_79, %c0_80, %c0_81] : memref<2x32x32xf32, #tpu.memory_space<vmem>>, vector<1x32x32xf32>
    %172 = vector.shape_cast %171 : vector<1x32x32xf32> to vector<32x32xf32>
    %cst_82 = arith.constant 0.000000e+00 : f32
    %173 = vector.broadcast %cst_82 : f32 to vector<8x32xf32>
    %174 = vector.extract_strided_slice %170 {offsets = [0, 0], sizes = [8, 8], strides = [1, 1]} : vector<8x96xf32> to vector<8x8xf32>
    %175 = vector.extract_strided_slice %170 {offsets = [0, 32], sizes = [8, 8], strides = [1, 1]} : vector<8x96xf32> to vector<8x8xf32>
    %176 = vector.extract_strided_slice %170 {offsets = [0, 64], sizes = [8, 8], strides = [1, 1]} : vector<8x96xf32> to vector<8x8xf32>
    %cst_83 = arith.constant dense<0.000000e+00> : vector<8x8xf32>
    %177 = tpu.matmul %174, %175, %cst_83 {dimension_numbers = #tpu.dot_dimension_numbers<[1], [1], [0], [0], [0, 0, 1, 0], [], []>} : vector<8x8xf32>, vector<8x8xf32>, vector<8x8xf32> -> vector<8x8xf32>
    %178 = arith.addf %177, %3 : vector<8x8xf32>
    %cst_84 = arith.constant 0.176776692 : f32
    %179 = vector.broadcast %cst_84 : f32 to vector<8x8xf32>
    %180 = arith.mulf %178, %179 : vector<8x8xf32>
    %cst_85 = arith.constant dense<0xFF800000> : vector<8xf32>
    %181 = vector.multi_reduction <maximumf>, %180, %cst_85 [1] : vector<8x8xf32> to vector<8xf32>
    %182 = vector.shape_cast %181 : vector<8xf32> to vector<8x1xf32>
    %183 = vector.broadcast %182 : vector<8x1xf32> to vector<8x8xf32>
    %184 = arith.subf %180, %183 : vector<8x8xf32>
    %185 = math.exp %184 : vector<8x8xf32>
    %cst_86 = arith.constant dense<0.000000e+00> : vector<8xf32>
    %186 = vector.multi_reduction <add>, %185, %cst_86 [1] : vector<8x8xf32> to vector<8xf32>
    %187 = vector.shape_cast %186 : vector<8xf32> to vector<8x1xf32>
    %188 = tpu.reciprocal %187 {approx = true} : vector<8x1xf32> -> vector<8x1xf32>
    %189 = vector.broadcast %188 : vector<8x1xf32> to vector<8x8xf32>
    %190 = arith.mulf %185, %189 : vector<8x8xf32>
    %191 = vector.extract_strided_slice %172 {offsets = [0, 0], sizes = [8, 32], strides = [1, 1]} : vector<32x32xf32> to vector<8x32xf32>
    %cst_87 = arith.constant dense<0.000000e+00> : vector<8x32xf32>
    %192 = tpu.matmul %176, %191, %cst_87 {dimension_numbers = #tpu.dot_dimension_numbers<[1], [0], [0], [1], [0, 0, 1, 1], [], []>} : vector<8x8xf32>, vector<8x32xf32>, vector<8x32xf32> -> vector<8x32xf32>
    %cst_88 = arith.constant dense<0.000000e+00> : vector<8x32xf32>
    %193 = tpu.matmul %190, %192, %cst_88 {dimension_numbers = #tpu.dot_dimension_numbers<[1], [0], [0], [1], [0, 0, 1, 1], [], []>} : vector<8x8xf32>, vector<8x32xf32>, vector<8x32xf32> -> vector<8x32xf32>
    %194 = arith.addf %173, %193 : vector<8x32xf32>
    %195 = vector.extract_strided_slice %170 {offsets = [0, 8], sizes = [8, 8], strides = [1, 1]} : vector<8x96xf32> to vector<8x8xf32>
    %196 = vector.extract_strided_slice %170 {offsets = [0, 40], sizes = [8, 8], strides = [1, 1]} : vector<8x96xf32> to vector<8x8xf32>
    %197 = vector.extract_strided_slice %170 {offsets = [0, 72], sizes = [8, 8], strides = [1, 1]} : vector<8x96xf32> to vector<8x8xf32>
    %cst_89 = arith.constant dense<0.000000e+00> : vector<8x8xf32>
    %198 = tpu.matmul %195, %196, %cst_89 {dimension_numbers = #tpu.dot_dimension_numbers<[1], [1], [0], [0], [0, 0, 1, 0], [], []>} : vector<8x8xf32>, vector<8x8xf32>, vector<8x8xf32> -> vector<8x8xf32>
    %199 = arith.addf %198, %3 : vector<8x8xf32>
    %cst_90 = arith.constant 0.176776692 : f32
    %200 = vector.broadcast %cst_90 : f32 to vector<8x8xf32>
    %201 = arith.mulf %199, %200 : vector<8x8xf32>
    %cst_91 = arith.constant dense<0xFF800000> : vector<8xf32>
    %202 = vector.multi_reduction <maximumf>, %201, %cst_91 [1] : vector<8x8xf32> to vector<8xf32>
    %203 = vector.shape_cast %202 : vector<8xf32> to vector<8x1xf32>
    %204 = vector.broadcast %203 : vector<8x1xf32> to vector<8x8xf32>
    %205 = arith.subf %201, %204 : vector<8x8xf32>
    %206 = math.exp %205 : vector<8x8xf32>
    %cst_92 = arith.constant dense<0.000000e+00> : vector<8xf32>
    %207 = vector.multi_reduction <add>, %206, %cst_92 [1] : vector<8x8xf32> to vector<8xf32>
    %208 = vector.shape_cast %207 : vector<8xf32> to vector<8x1xf32>
    %209 = tpu.reciprocal %208 {approx = true} : vector<8x1xf32> -> vector<8x1xf32>
    %210 = vector.broadcast %209 : vector<8x1xf32> to vector<8x8xf32>
    %211 = arith.mulf %206, %210 : vector<8x8xf32>
    %212 = vector.extract_strided_slice %172 {offsets = [8, 0], sizes = [8, 32], strides = [1, 1]} : vector<32x32xf32> to vector<8x32xf32>
    %cst_93 = arith.constant dense<0.000000e+00> : vector<8x32xf32>
    %213 = tpu.matmul %197, %212, %cst_93 {dimension_numbers = #tpu.dot_dimension_numbers<[1], [0], [0], [1], [0, 0, 1, 1], [], []>} : vector<8x8xf32>, vector<8x32xf32>, vector<8x32xf32> -> vector<8x32xf32>
    %cst_94 = arith.constant dense<0.000000e+00> : vector<8x32xf32>
    %214 = tpu.matmul %211, %213, %cst_94 {dimension_numbers = #tpu.dot_dimension_numbers<[1], [0], [0], [1], [0, 0, 1, 1], [], []>} : vector<8x8xf32>, vector<8x32xf32>, vector<8x32xf32> -> vector<8x32xf32>
    %215 = arith.addf %194, %214 : vector<8x32xf32>
    %216 = vector.extract_strided_slice %170 {offsets = [0, 16], sizes = [8, 8], strides = [1, 1]} : vector<8x96xf32> to vector<8x8xf32>
    %217 = vector.extract_strided_slice %170 {offsets = [0, 48], sizes = [8, 8], strides = [1, 1]} : vector<8x96xf32> to vector<8x8xf32>
    %218 = vector.extract_strided_slice %170 {offsets = [0, 80], sizes = [8, 8], strides = [1, 1]} : vector<8x96xf32> to vector<8x8xf32>
    %cst_95 = arith.constant dense<0.000000e+00> : vector<8x8xf32>
    %219 = tpu.matmul %216, %217, %cst_95 {dimension_numbers = #tpu.dot_dimension_numbers<[1], [1], [0], [0], [0, 0, 1, 0], [], []>} : vector<8x8xf32>, vector<8x8xf32>, vector<8x8xf32> -> vector<8x8xf32>
    %220 = arith.addf %219, %3 : vector<8x8xf32>
    %cst_96 = arith.constant 0.176776692 : f32
    %221 = vector.broadcast %cst_96 : f32 to vector<8x8xf32>
    %222 = arith.mulf %220, %221 : vector<8x8xf32>
    %cst_97 = arith.constant dense<0xFF800000> : vector<8xf32>
    %223 = vector.multi_reduction <maximumf>, %222, %cst_97 [1] : vector<8x8xf32> to vector<8xf32>
    %224 = vector.shape_cast %223 : vector<8xf32> to vector<8x1xf32>
    %225 = vector.broadcast %224 : vector<8x1xf32> to vector<8x8xf32>
    %226 = arith.subf %222, %225 : vector<8x8xf32>
    %227 = math.exp %226 : vector<8x8xf32>
    %cst_98 = arith.constant dense<0.000000e+00> : vector<8xf32>
    %228 = vector.multi_reduction <add>, %227, %cst_98 [1] : vector<8x8xf32> to vector<8xf32>
    %229 = vector.shape_cast %228 : vector<8xf32> to vector<8x1xf32>
    %230 = tpu.reciprocal %229 {approx = true} : vector<8x1xf32> -> vector<8x1xf32>
    %231 = vector.broadcast %230 : vector<8x1xf32> to vector<8x8xf32>
    %232 = arith.mulf %227, %231 : vector<8x8xf32>
    %233 = vector.extract_strided_slice %172 {offsets = [16, 0], sizes = [8, 32], strides = [1, 1]} : vector<32x32xf32> to vector<8x32xf32>
    %cst_99 = arith.constant dense<0.000000e+00> : vector<8x32xf32>
    %234 = tpu.matmul %218, %233, %cst_99 {dimension_numbers = #tpu.dot_dimension_numbers<[1], [0], [0], [1], [0, 0, 1, 1], [], []>} : vector<8x8xf32>, vector<8x32xf32>, vector<8x32xf32> -> vector<8x32xf32>
    %cst_100 = arith.constant dense<0.000000e+00> : vector<8x32xf32>
    %235 = tpu.matmul %232, %234, %cst_100 {dimension_numbers = #tpu.dot_dimension_numbers<[1], [0], [0], [1], [0, 0, 1, 1], [], []>} : vector<8x8xf32>, vector<8x32xf32>, vector<8x32xf32> -> vector<8x32xf32>
    %236 = arith.addf %215, %235 : vector<8x32xf32>
    %237 = vector.extract_strided_slice %170 {offsets = [0, 24], sizes = [8, 8], strides = [1, 1]} : vector<8x96xf32> to vector<8x8xf32>
    %238 = vector.extract_strided_slice %170 {offsets = [0, 56], sizes = [8, 8], strides = [1, 1]} : vector<8x96xf32> to vector<8x8xf32>
    %239 = vector.extract_strided_slice %170 {offsets = [0, 88], sizes = [8, 8], strides = [1, 1]} : vector<8x96xf32> to vector<8x8xf32>
    %cst_101 = arith.constant dense<0.000000e+00> : vector<8x8xf32>
    %240 = tpu.matmul %237, %238, %cst_101 {dimension_numbers = #tpu.dot_dimension_numbers<[1], [1], [0], [0], [0, 0, 1, 0], [], []>} : vector<8x8xf32>, vector<8x8xf32>, vector<8x8xf32> -> vector<8x8xf32>
    %241 = arith.addf %240, %3 : vector<8x8xf32>
    %cst_102 = arith.constant 0.176776692 : f32
    %242 = vector.broadcast %cst_102 : f32 to vector<8x8xf32>
    %243 = arith.mulf %241, %242 : vector<8x8xf32>
    %cst_103 = arith.constant dense<0xFF800000> : vector<8xf32>
    %244 = vector.multi_reduction <maximumf>, %243, %cst_103 [1] : vector<8x8xf32> to vector<8xf32>
    %245 = vector.shape_cast %244 : vector<8xf32> to vector<8x1xf32>
    %246 = vector.broadcast %245 : vector<8x1xf32> to vector<8x8xf32>
    %247 = arith.subf %243, %246 : vector<8x8xf32>
    %248 = math.exp %247 : vector<8x8xf32>
    %cst_104 = arith.constant dense<0.000000e+00> : vector<8xf32>
    %249 = vector.multi_reduction <add>, %248, %cst_104 [1] : vector<8x8xf32> to vector<8xf32>
    %250 = vector.shape_cast %249 : vector<8xf32> to vector<8x1xf32>
    %251 = tpu.reciprocal %250 {approx = true} : vector<8x1xf32> -> vector<8x1xf32>
    %252 = vector.broadcast %251 : vector<8x1xf32> to vector<8x8xf32>
    %253 = arith.mulf %248, %252 : vector<8x8xf32>
    %254 = vector.extract_strided_slice %172 {offsets = [24, 0], sizes = [8, 32], strides = [1, 1]} : vector<32x32xf32> to vector<8x32xf32>
    %cst_105 = arith.constant dense<0.000000e+00> : vector<8x32xf32>
    %255 = tpu.matmul %239, %254, %cst_105 {dimension_numbers = #tpu.dot_dimension_numbers<[1], [0], [0], [1], [0, 0, 1, 1], [], []>} : vector<8x8xf32>, vector<8x32xf32>, vector<8x32xf32> -> vector<8x32xf32>
    %cst_106 = arith.constant dense<0.000000e+00> : vector<8x32xf32>
    %256 = tpu.matmul %253, %255, %cst_106 {dimension_numbers = #tpu.dot_dimension_numbers<[1], [0], [0], [1], [0, 0, 1, 1], [], []>} : vector<8x8xf32>, vector<8x32xf32>, vector<8x32xf32> -> vector<8x32xf32>
    %257 = arith.addf %236, %256 : vector<8x32xf32>
    %c1_107 = arith.constant 1 : index
    %c0_108 = arith.constant 0 : index
    %c0_109 = arith.constant 0 : index
    %258 = vector.load %arg5[%c1_107, %c0_108, %c0_109] : memref<2x1x32xf32, #tpu.memory_space<vmem>>, vector<1x1x32xf32>
    %259 = vector.shape_cast %258 : vector<1x1x32xf32> to vector<1x32xf32>
    %260 = vector.broadcast %259 : vector<1x32xf32> to vector<8x32xf32>
    %261 = arith.addf %257, %260 : vector<8x32xf32>
    %262 = arith.addf %261, %167 : vector<8x32xf32>
    %c1_110 = arith.constant 1 : index
    %c0_111 = arith.constant 0 : index
    %c0_112 = arith.constant 0 : index
    %263 = vector.load %arg6[%c1_110, %c0_111, %c0_112] : memref<2x1x32xf32, #tpu.memory_space<vmem>>, vector<1x1x32xf32>
    %264 = vector.shape_cast %263 : vector<1x1x32xf32> to vector<1x32xf32>
    %c1_113 = arith.constant 1 : index
    %c0_114 = arith.constant 0 : index
    %c0_115 = arith.constant 0 : index
    %265 = vector.load %arg7[%c1_113, %c0_114, %c0_115] : memref<2x1x32xf32, #tpu.memory_space<vmem>>, vector<1x1x32xf32>
    %266 = vector.shape_cast %265 : vector<1x1x32xf32> to vector<1x32xf32>
    %cst_116 = arith.constant dense<0.000000e+00> : vector<8xf32>
    %267 = vector.multi_reduction <add>, %262, %cst_116 [1] : vector<8x32xf32> to vector<8xf32>
    %268 = vector.shape_cast %267 : vector<8xf32> to vector<8x1xf32>
    %cst_117 = arith.constant 3.200000e+01 : f32
    %269 = vector.broadcast %cst_117 : f32 to vector<8x1xf32>
    %270 = arith.divf %268, %269 : vector<8x1xf32>
    %271 = vector.broadcast %270 : vector<8x1xf32> to vector<8x32xf32>
    %272 = arith.subf %262, %271 : vector<8x32xf32>
    %273 = arith.mulf %272, %272 : vector<8x32xf32>
    %cst_118 = arith.constant dense<0.000000e+00> : vector<8xf32>
    %274 = vector.multi_reduction <add>, %273, %cst_118 [1] : vector<8x32xf32> to vector<8xf32>
    %275 = vector.shape_cast %274 : vector<8xf32> to vector<8x1xf32>
    %cst_119 = arith.constant 3.200000e+01 : f32
    %276 = vector.broadcast %cst_119 : f32 to vector<8x1xf32>
    %277 = arith.divf %275, %276 : vector<8x1xf32>
    %278 = vector.broadcast %270 : vector<8x1xf32> to vector<8x32xf32>
    %279 = arith.subf %262, %278 : vector<8x32xf32>
    %cst_120 = arith.constant 9.99999974E-6 : f32
    %280 = vector.broadcast %cst_120 : f32 to vector<8x1xf32>
    %281 = arith.addf %277, %280 : vector<8x1xf32>
    %282 = math.rsqrt %281 : vector<8x1xf32>
    %283 = vector.broadcast %282 : vector<8x1xf32> to vector<8x32xf32>
    %284 = arith.mulf %279, %283 : vector<8x32xf32>
    %285 = vector.broadcast %264 : vector<1x32xf32> to vector<8x32xf32>
    %286 = arith.mulf %284, %285 : vector<8x32xf32>
    %287 = vector.broadcast %266 : vector<1x32xf32> to vector<8x32xf32>
    %288 = arith.addf %286, %287 : vector<8x32xf32>
    %c1_121 = arith.constant 1 : index
    %c0_122 = arith.constant 0 : index
    %c0_123 = arith.constant 0 : index
    %289 = vector.load %arg8[%c1_121, %c0_122, %c0_123] : memref<2x32x128xf32, #tpu.memory_space<vmem>>, vector<1x32x128xf32>
    %290 = vector.shape_cast %289 : vector<1x32x128xf32> to vector<32x128xf32>
    %cst_124 = arith.constant dense<0.000000e+00> : vector<8x128xf32>
    %291 = tpu.matmul %288, %290, %cst_124 {dimension_numbers = #tpu.dot_dimension_numbers<[1], [0], [0], [1], [0, 0, 1, 1], [], []>} : vector<8x32xf32>, vector<32x128xf32>, vector<8x128xf32> -> vector<8x128xf32>
    %c1_125 = arith.constant 1 : index
    %c0_126 = arith.constant 0 : index
    %c0_127 = arith.constant 0 : index
    %292 = vector.load %arg9[%c1_125, %c0_126, %c0_127] : memref<2x1x128xf32, #tpu.memory_space<vmem>>, vector<1x1x128xf32>
    %293 = vector.shape_cast %292 : vector<1x1x128xf32> to vector<1x128xf32>
    %294 = vector.broadcast %293 : vector<1x128xf32> to vector<8x128xf32>
    %295 = arith.addf %291, %294 : vector<8x128xf32>
    %cst_128 = arith.constant 0.000000e+00 : f32
    %296 = vector.broadcast %cst_128 : f32 to vector<8x128xf32>
    %297 = arith.maximumf %295, %296 : vector<8x128xf32>
    %c1_129 = arith.constant 1 : index
    %c0_130 = arith.constant 0 : index
    %c0_131 = arith.constant 0 : index
    %298 = vector.load %arg10[%c1_129, %c0_130, %c0_131] : memref<2x128x32xf32, #tpu.memory_space<vmem>>, vector<1x128x32xf32>
    %299 = vector.shape_cast %298 : vector<1x128x32xf32> to vector<128x32xf32>
    %cst_132 = arith.constant dense<0.000000e+00> : vector<8x32xf32>
    %300 = tpu.matmul %297, %299, %cst_132 {dimension_numbers = #tpu.dot_dimension_numbers<[1], [0], [0], [1], [0, 0, 1, 1], [], []>} : vector<8x128xf32>, vector<128x32xf32>, vector<8x32xf32> -> vector<8x32xf32>
    %c1_133 = arith.constant 1 : index
    %c0_134 = arith.constant 0 : index
    %c0_135 = arith.constant 0 : index
    %301 = vector.load %arg11[%c1_133, %c0_134, %c0_135] : memref<2x1x32xf32, #tpu.memory_space<vmem>>, vector<1x1x32xf32>
    %302 = vector.shape_cast %301 : vector<1x1x32xf32> to vector<1x32xf32>
    %303 = vector.broadcast %302 : vector<1x32xf32> to vector<8x32xf32>
    %304 = arith.addf %300, %303 : vector<8x32xf32>
    %305 = arith.addf %304, %288 : vector<8x32xf32>
    %c1_136 = arith.constant 1 : index
    %c0_137 = arith.constant 0 : index
    %c0_138 = arith.constant 0 : index
    %306 = vector.load %arg12[%c1_136, %c0_137, %c0_138] : memref<2x1x32xf32, #tpu.memory_space<vmem>>, vector<1x1x32xf32>
    %307 = vector.shape_cast %306 : vector<1x1x32xf32> to vector<1x32xf32>
    %c1_139 = arith.constant 1 : index
    %c0_140 = arith.constant 0 : index
    %c0_141 = arith.constant 0 : index
    %308 = vector.load %arg13[%c1_139, %c0_140, %c0_141] : memref<2x1x32xf32, #tpu.memory_space<vmem>>, vector<1x1x32xf32>
    %309 = vector.shape_cast %308 : vector<1x1x32xf32> to vector<1x32xf32>
    %cst_142 = arith.constant dense<0.000000e+00> : vector<8xf32>
    %310 = vector.multi_reduction <add>, %305, %cst_142 [1] : vector<8x32xf32> to vector<8xf32>
    %311 = vector.shape_cast %310 : vector<8xf32> to vector<8x1xf32>
    %cst_143 = arith.constant 3.200000e+01 : f32
    %312 = vector.broadcast %cst_143 : f32 to vector<8x1xf32>
    %313 = arith.divf %311, %312 : vector<8x1xf32>
    %314 = vector.broadcast %313 : vector<8x1xf32> to vector<8x32xf32>
    %315 = arith.subf %305, %314 : vector<8x32xf32>
    %316 = arith.mulf %315, %315 : vector<8x32xf32>
    %cst_144 = arith.constant dense<0.000000e+00> : vector<8xf32>
    %317 = vector.multi_reduction <add>, %316, %cst_144 [1] : vector<8x32xf32> to vector<8xf32>
    %318 = vector.shape_cast %317 : vector<8xf32> to vector<8x1xf32>
    %cst_145 = arith.constant 3.200000e+01 : f32
    %319 = vector.broadcast %cst_145 : f32 to vector<8x1xf32>
    %320 = arith.divf %318, %319 : vector<8x1xf32>
    %321 = vector.broadcast %313 : vector<8x1xf32> to vector<8x32xf32>
    %322 = arith.subf %305, %321 : vector<8x32xf32>
    %cst_146 = arith.constant 9.99999974E-6 : f32
    %323 = vector.broadcast %cst_146 : f32 to vector<8x1xf32>
    %324 = arith.addf %320, %323 : vector<8x1xf32>
    %325 = math.rsqrt %324 : vector<8x1xf32>
    %326 = vector.broadcast %325 : vector<8x1xf32> to vector<8x32xf32>
    %327 = arith.mulf %322, %326 : vector<8x32xf32>
    %328 = vector.broadcast %307 : vector<1x32xf32> to vector<8x32xf32>
    %329 = arith.mulf %327, %328 : vector<8x32xf32>
    %330 = vector.broadcast %309 : vector<1x32xf32> to vector<8x32xf32>
    %331 = arith.addf %329, %330 : vector<8x32xf32>
    %c0_147 = arith.constant 0 : index
    %c0_148 = arith.constant 0 : index
    %332 = vector.load %arg14[%c0_147, %c0_148] : memref<32x512xf32, #tpu.memory_space<vmem>>, vector<32x512xf32>
    %cst_149 = arith.constant dense<0.000000e+00> : vector<8x512xf32>
    %333 = tpu.matmul %331, %332, %cst_149 {dimension_numbers = #tpu.dot_dimension_numbers<[1], [0], [0], [1], [0, 0, 1, 1], [], []>} : vector<8x32xf32>, vector<32x512xf32>, vector<8x512xf32> -> vector<8x512xf32>
    %c0_150 = arith.constant 0 : index
    %c0_151 = arith.constant 0 : index
    %334 = vector.load %arg15[%c0_150, %c0_151] : memref<1x512xf32, #tpu.memory_space<vmem>>, vector<1x512xf32>
    %335 = vector.broadcast %334 : vector<1x512xf32> to vector<8x512xf32>
    %336 = arith.addf %333, %335 : vector<8x512xf32>
    %c0_152 = arith.constant 0 : index
    %c0_153 = arith.constant 0 : index
    %c0_154 = arith.constant 0 : index
    %337 = vector.load %arg16[%c0_152, %c0_153, %c0_154] : memref<1x8x512xf32, #tpu.memory_space<vmem>>, vector<1x8x512xf32>
    %338 = vector.shape_cast %337 : vector<1x8x512xf32> to vector<8x512xf32>
    %339 = vector.shape_cast %336 : vector<8x512xf32> to vector<1x8x512xf32>
    tpu.vector_store %arg16[%c0_152, %c0_153, %c0_154], %339 {strides = array<i32>} : memref<1x8x512xf32, #tpu.memory_space<vmem>>, vector<1x8x512xf32>,
    return
  }
  func.func @transform_0(%arg0: i32) -> (i32, i32, i32) {
    %c0_i32 = arith.constant 0 : i32
    %c0_i32_0 = arith.constant 0 : i32
    %c0_i32_1 = arith.constant 0 : i32
    return %arg0, %c0_i32, %c0_i32_0 : i32, i32, i32
  }
  func.func @transform_1(%arg0: i32) -> (i32, i32, i32) {
    %c0_i32 = arith.constant 0 : i32
    %c0_i32_0 = arith.constant 0 : i32
    %c0_i32_1 = arith.constant 0 : i32
    return %arg0, %c0_i32, %c0_i32_0 : i32, i32, i32
  }
  func.func @transform_2(%arg0: i32) -> (i32, i32, i32) {
    %c0_i32 = arith.constant 0 : i32
    %c0_i32_0 = arith.constant 0 : i32
    %c0_i32_1 = arith.constant 0 : i32
    %c0_i32_2 = arith.constant 0 : i32
    return %c0_i32, %c0_i32_0, %c0_i32_1 : i32, i32, i32
  }
  func.func @transform_3(%arg0: i32) -> (i32, i32, i32) {
    %c0_i32 = arith.constant 0 : i32
    %c0_i32_0 = arith.constant 0 : i32
    %c0_i32_1 = arith.constant 0 : i32
    %c0_i32_2 = arith.constant 0 : i32
    return %c0_i32, %c0_i32_0, %c0_i32_1 : i32, i32, i32
  }
  func.func @transform_4(%arg0: i32) -> (i32, i32, i32) {
    %c0_i32 = arith.constant 0 : i32
    %c0_i32_0 = arith.constant 0 : i32
    %c0_i32_1 = arith.constant 0 : i32
    %c0_i32_2 = arith.constant 0 : i32
    return %c0_i32, %c0_i32_0, %c0_i32_1 : i32, i32, i32
  }
  func.func @transform_5(%arg0: i32) -> (i32, i32, i32) {
    %c0_i32 = arith.constant 0 : i32
    %c0_i32_0 = arith.constant 0 : i32
    %c0_i32_1 = arith.constant 0 : i32
    %c0_i32_2 = arith.constant 0 : i32
    return %c0_i32, %c0_i32_0, %c0_i32_1 : i32, i32, i32
  }
  func.func @transform_6(%arg0: i32) -> (i32, i32, i32) {
    %c0_i32 = arith.constant 0 : i32
    %c0_i32_0 = arith.constant 0 : i32
    %c0_i32_1 = arith.constant 0 : i32
    %c0_i32_2 = arith.constant 0 : i32
    return %c0_i32, %c0_i32_0, %c0_i32_1 : i32, i32, i32
  }
  func.func @transform_7(%arg0: i32) -> (i32, i32, i32) {
    %c0_i32 = arith.constant 0 : i32
    %c0_i32_0 = arith.constant 0 : i32
    %c0_i32_1 = arith.constant 0 : i32
    %c0_i32_2 = arith.constant 0 : i32
    return %c0_i32, %c0_i32_0, %c0_i32_1 : i32, i32, i32
  }
  func.func @transform_8(%arg0: i32) -> (i32, i32, i32) {
    %c0_i32 = arith.constant 0 : i32
    %c0_i32_0 = arith.constant 0 : i32
    %c0_i32_1 = arith.constant 0 : i32
    %c0_i32_2 = arith.constant 0 : i32
    return %c0_i32, %c0_i32_0, %c0_i32_1 : i32, i32, i32
  }
  func.func @transform_9(%arg0: i32) -> (i32, i32, i32) {
    %c0_i32 = arith.constant 0 : i32
    %c0_i32_0 = arith.constant 0 : i32
    %c0_i32_1 = arith.constant 0 : i32
    %c0_i32_2 = arith.constant 0 : i32
    return %c0_i32, %c0_i32_0, %c0_i32_1 : i32, i32, i32
  }
  func.func @transform_10(%arg0: i32) -> (i32, i32, i32) {
    %c0_i32 = arith.constant 0 : i32
    %c0_i32_0 = arith.constant 0 : i32
    %c0_i32_1 = arith.constant 0 : i32
    %c0_i32_2 = arith.constant 0 : i32
    return %c0_i32, %c0_i32_0, %c0_i32_1 : i32, i32, i32
  }
  func.func @transform_11(%arg0: i32) -> (i32, i32, i32) {
    %c0_i32 = arith.constant 0 : i32
    %c0_i32_0 = arith.constant 0 : i32
    %c0_i32_1 = arith.constant 0 : i32
    %c0_i32_2 = arith.constant 0 : i32
    return %c0_i32, %c0_i32_0, %c0_i32_1 : i32, i32, i32
  }
  func.func @transform_12(%arg0: i32) -> (i32, i32, i32) {
    %c0_i32 = arith.constant 0 : i32
    %c0_i32_0 = arith.constant 0 : i32
    %c0_i32_1 = arith.constant 0 : i32
    %c0_i32_2 = arith.constant 0 : i32
    return %c0_i32, %c0_i32_0, %c0_i32_1 : i32, i32, i32
  }
  func.func @transform_13(%arg0: i32) -> (i32, i32) {
    %c0_i32 = arith.constant 0 : i32
    %c0_i32_0 = arith.constant 0 : i32
    %c0_i32_1 = arith.constant 0 : i32
    return %c0_i32, %c0_i32_0 : i32, i32
  }
  func.func @transform_14(%arg0: i32) -> (i32, i32) {
    %c0_i32 = arith.constant 0 : i32
    %c0_i32_0 = arith.constant 0 : i32
    %c0_i32_1 = arith.constant 0 : i32
    return %c0_i32, %c0_i32_0 : i32, i32
  }
  func.func @transform_15(%arg0: i32) -> (i32, i32, i32) {
    %c0_i32 = arith.constant 0 : i32
    %c0_i32_0 = arith.constant 0 : i32
    %c0_i32_1 = arith.constant 0 : i32
    return %arg0, %c0_i32, %c0_i32_0 : i32, i32, i32
  }
}

</mosaic_0001>

<bundles_post_ra>
// kernel: gpt2_forward.1
= control target key start
LH: loop header
LB: loop body
LE: loop exit
PB: predicated region body
PF: predicated region fallthrough
CT: control target
= control target key end

     0   :  { %s2611_s0 = inlined_call_operand.vmem [shape: f32[2,8,32], index: 0, kind: input, shape index: {}]   ;;  %s2612_s1 = inlined_call_operand.vmem [shape: f32[2,8,8], index: 1, kind: input, shape index: {}]   ;;  %s2613_s2 = inlined_call_operand.vmem [shape: f32[2,32,96], index: 2, kind: input, shape index: {}]   ;;  %s2614_s3 = inlined_call_operand.vmem [shape: f32[2,32,32], index: 3, kind: input, shape index: {}]   ;;  %s2615_s4 = inlined_call_operand.vmem [shape: f32[2,1,32], index: 4, kind: input, shape index: {}]   ;;  %s2616_s5 = inlined_call_operand.vmem [shape: f32[2,1,32], index: 5, kind: input, shape index: {}]   ;;  %s2617_s6 = inlined_call_operand.vmem [shape: f32[2,1,32], index: 6, kind: input, shape index: {}]   ;;  %s2618_s7 = inlined_call_operand.vmem [shape: f32[2,32,128], index: 7, kind: input, shape index: {}]   ;;  %s2619_s8 = inlined_call_operand.vmem [shape: f32[2,1,128], index: 8, kind: input, shape index: {}]   ;;  %s2620_s9 = inlined_call_operand.vmem [shape: f32[2,128,32], index: 9, kind: input, shape index: {}]   ;;  %s2621_s10 = inlined_call_operand.vmem [shape: f32[2,1,32], index: 10, kind: input, shape index: {}]   ;;  %s2622_s11 = inlined_call_operand.vmem [shape: f32[2,1,32], index: 11, kind: input, shape index: {}]   ;;  %s2623_s12 = inlined_call_operand.vmem [shape: f32[2,1,32], index: 12, kind: input, shape index: {}]   ;;  %s2624_s13 = inlined_call_operand.vmem [shape: f32[32,512], index: 13, kind: input, shape index: {}]   ;;  %s2625_s14 = inlined_call_operand.vmem [shape: f32[1,512], index: 14, kind: input, shape index: {}]   ;;  %s2626_s15 = inlined_call_operand.hbm [shape: f32[2,8,512], index: 15, kind: output, shape index: {}]  }
   0x1   :  { %2642 = sst [smem:[#allocation8_spill]] %s2611_s0 }
   0x2   :  { %2643 = sst [smem:[#allocation9_spill]] %s2612_s1 }
   0x3   :  { %20 = vsyncpa [#allocation3], 0 }
   0x4   :  { %22 = vsyncpa [#allocation3 + $0x1], 0  ;;  %s2127_s18 = smov 0   ;;  %s2129_s19 = smov 0  }
   0x5   :  { %s2131_s20 = smov 0   ;;  %s2133_s21 = smov 0  }
   0x6 LB: > { %2644 = sst [smem:[#allocation5_spill]] %s2029_s20  ;;  %s2148_s22 = sadd.s32 4294967295, %s2033_s21   ;;  %s2033_s21 = sphi %s2133_s21, %s2663_s21   ;;  %s2029_s20 = sphi %s2131_s20, %s2665_s20   ;;  %s2025_s19 = sphi %s2129_s19, %s2667_s19   ;;  %s2021_s18 = sphi %s2127_s18, %s2666_s18  }
   0x7   : > { %s1776_s23 = sadd.s32 4294967294, %s2033_s21   ;;  %s2152_s24 = sadd.s32 1, %s2033_s21  }
   0x8   : > { %2645 = sst [smem:[#allocation6_spill]] %s2152_s24  ;;  %s360_s25 = sadd.s32 1, %s2029_s20 }
   0x9   : > { %s357_s26 = ssub.s32 %s2033_s21, %s2152_s24  ;;  %p370_p0 = scmp.ne.s32.totalorder %s2029_s20, %s2025_s19 }
   0xa   : > { %p358_p1 = scmp.eq.s32.totalorder %s357_s26, 0  ;;  %p371_p2 = scmp.eq.s32.totalorder %s2148_s22, 1 }
   0xb   : > { %p376_p3 = scmp.ne.s32.totalorder %s2025_s19, %s2021_s18  ;;  %p377_p4 = scmp.eq.s32.totalorder %s1776_s23, 1 }
   0xc   : > { %s2163_s27 = scalar_select %p358_p1, %s2029_s20, %s360_s25  }
   0xd   : > { %p2165_p5 = por %p371_p2, %p370_p0  ;;  %p2169_p6 = por %p377_p4, %p376_p3 }
   0xe   : > { %2646 = sst [smem:[#allocation7_spill]] %s2163_s27  ;;  %p1779_p7 = scmp.ge.s32.totalorder %s2033_s21, 1 }
   0xf   : > { %p448_p8 = scmp.lt.s32.totalorder %s2033_s21, 3 }
  0x11   : > { %p449_p9 = pnand %p1779_p7, %p448_p8 }
  0x12   : > { %p499_p10 = scmp.lt.s32.totalorder (!%p449_p9), %s2148_s22, 1  ;;  %s2649_s0 = sld [smem:[#allocation8_spill]] (!%p449_p9) }
  0x13   : > { %452 = sbr.rel (%p449_p9) target bundleno = 3845 (0xf05), region = 80  ;;  %s2630_s25 = smov (!%p449_p9), 120  }
  0x14   : > { %s2631_s26 = smov (!%p449_p9), 96   ;;  %s2632_s30 = smov (!%p449_p9), 64  }
  0x15   : > { %s2634_s16 = smov (!%p449_p9), 104   ;;  %s2639_s17 = smov (!%p449_p9), 56  }
  0x16   : > { %s2637_s23 = smov (!%p449_p9), 48   ;;  %s2651_s1 = sld [smem:[#allocation9_spill]] (!%p449_p9) }
  0x18   : > { %v512_v0 = vld [vmem:[%s2613_s2 + $0x18] sm:$0xff]  ;;  %v511_v1 = vld [vmem:[%s2613_s2 + $0x10] sm:$0xff]  ;;  %v510_v2 = vld [vmem:[%s2613_s2 + $0x8] sm:$0xff]  ;;  %s2186_s27 = scalar_select %p499_p10, %s2148_s22, 1  ;;  %vm513_vm0 = vcmask 261120   ;;  %vm544_vm1 = vcmask 64512  }
  0x19   : > { %529 = vmatpush.msra.mxu0 %v512_v0  ;;  %v509_v3 = vld [vmem:[%s2613_s2] sm:$0xff]  ;;  %v538_v7 = vld [vmem:[%s2614_s3 + $0x8] sm:$0xff]  ;;  %v539_v9 = vld [vmem:[%s2614_s3 + $0x10] sm:$0xff] }
  0x1a   : > { %s2633_s20 = sshll.u32 %s2186_s27, 3  ;;  %v537_v6 = vld [vmem:[%s2614_s3] sm:$0xff]  ;;  %774 = vmatpush.msra.mxu2 %v539_v9  ;;  %v540_v32 = vld [vmem:[%s2614_s3 + $0x18] sm:$0xff] }
  0x1b   : > { %530 = vmatpush.msra.mxu0 %v511_v1  ;;  %s502_s24 = scalar_lea.vmem %s2649_s0, %s2633_s20  ;;  %600 = vmatpush.msra.mxu3 %v537_v6  ;;  %s2650_s20 = sshll.u32 %s2186_s27, 3 }
  0x1c   : > { %v2197_v4 = vld [vmem:[%s502_s24] sm:$0xff]  ;;  %s2635_s24 = smov 72   ;;  %s2640_s27 = smov 112  }
  0x1d   : > { %531 = vmatpush.msra.mxu0 %v510_v2  ;;  %s2658_s0 = smov 72  }
  0x1f   : > { %532 = vmatpush.msra.mxu0 %v509_v3 }
  0x20   : > { %1783 = vmatmul.msk.f32.vlgmr.msra.gmra.mxu0 %vm513_vm0, %v2197_v4 }
  0x21   : > { %664 = vmatpush.msrb.mxu0 %v538_v7 }
  0x9d   : > { %v2201_v5 = vpop.f32.mrf.mxu0 }
  0x9e   : > { %605 = vrot.lane.b32.xlu2 %v2201_v5, %s2630_s25  ;;  %542 = vrot.lane.b32.xlu0 %v2201_v5, %s2631_s26  ;;  %s2652_s26 = smov 96   ;;  %s2655_s25 = smov 112  }
  0xa6   : > { %581 = vrot.lane.b32.xlu0 %v2201_v5, %s2632_s30  ;;  %s506_s30 = scalar_lea.vmem %s2651_s1, %s2650_s20  ;;  %s2636_s20 = smov 40  }
  0xa7   : > { %v2237_v15 = vld [vmem:[%s506_s30] sm:$0xff]  ;;  %s2653_s30 = smov 120   ;;  %s2662_s1 = smov 40  }
  0xae   : > { %805 = vrot.lane.b32.xlu0 %v2201_v5, %s2635_s24  ;;  %s2641_s24 = smov 88  }
  0xb6   : > { %803 = vrot.lane.b32.xlu0 %v2201_v5, %s2634_s16  ;;  %s2638_s16 = smov 80  }
  0xbe   : > { %645 = vrot.lane.b32.xlu0 %v2201_v5, %s2639_s17  ;;  %s2656_s17 = smov 56  }
  0xc6   : > { %755 = vrot.lane.b32.xlu0 %v2201_v5, %s2637_s23  ;;  %s2657_s23 = smov 80  }
  0xf8   : > { %v606_v29 = vpop.permute.xlu2 %605 }
 0x110   : > { %v543_v8 = vpop.permute.xlu0 %542 }
 0x111   : > { %1784 = vmatpush.xpose.msk.msra.mxu1 %vm544_vm1, %v543_v8 }
 0x114   : > { %1785 = vmatmul.msk.f32.vlgmr.msra.gmra.mxu1 %vm544_vm1, %v2201_v5 }
 0x118   : > { %v582_v10 = vpop.permute.xlu0 %581 }
 0x119   : > { %1786 = vmatmul.msk.f32.vlgmr.msra.gmra.mxu3 %vm544_vm1, %v582_v10 }
 0x120   : > { %v806_v11 = vpop.permute.xlu0 %805 }
 0x128   : > { %v804_v12 = vpop.permute.xlu0 %803 }
 0x130   : > { %v646_v13 = vpop.permute.xlu0 %645 }
 0x131   : > { %1789 = vmatmul.msk.f32.vlgmr.msrb.gmra.mxu0 %vm544_vm1, %v646_v13 }
 0x138   : > { %v756_v14 = vpop.permute.xlu0 %755 }
 0x139   : > { %1794 = vmatmul.msk.f32.vlgmr.msra.gmra.mxu2 %vm544_vm1, %v756_v14 }
 0x191   : > { %v566_v16 = vpop.f32.mrf.mxu1 }
 0x192   : > { %v567_v17 = vadd.f32 %v566_v16, %v2237_v15 }
 0x194   : > { %v569_v18 = vmul.f32 0.17677669, %v567_v17  ;;  %v1915_v17 = vld [vmem:[%s2615_s4] ss:$0 sm:$0xff] }
 0x196   : > { %v570_v19 = vsel %vm544_vm1, %v569_v18, -inf }
 0x197   : > { %571 = vmax.xlane.f32.xlu1 %v570_v19 }
 0x19c   : > { %v602_v28 = vpop.f32.mrf.mxu3 }
 0x1ae   : > { %v666_v20 = vpop.f32.mrf.mxu0 }
 0x1af   : > { %687 = vmatpush.msrb.mxu1 %v666_v20 }
 0x1b0   : > { %607 = vrot.lane.b32.xlu1 %v2201_v5, %s2641_s24  ;;  %s2659_s24 = smov 104  }
 0x1b8   : > { %715 = vrot.lane.b32.xlu1 %v2201_v5, %s2640_s27  ;;  %s2660_s27 = smov 64  }
 0x1bc   : > { %v776_v21 = vpop.f32.mrf.mxu2 }
 0x1bd   : > { %797 = vmatpush.msra.mxu1 %v776_v21 }
 0x20a   : > { %v572_v22 = vpop.xlane.xlu1 %571 }
 0x20b   : > { %v573_v23 = vsub.f32 %v569_v18, %v572_v22 }
 0x20d   : > { %v574_v24 = vmul.f32 1.442695, %v573_v23  ;;  %v2046_v23 = vmov 32.0  }
 0x20f   : > { %1929 = vpow2.f32 %v574_v24 }
 0x215   : > { %v1930_v25 = vpop.eup %1929 }
 0x216   : > { %v576_v26 = vsel %vm544_vm1, %v1930_v25, 0.0 }
 0x217   : > { %577 = vadd.xlane.f32.xlu2 %v576_v26 }
 0x222   : > { %v608_v27 = vpop.permute.xlu1 %607 }
 0x223   : > { %1787 = vmatpush.xpose.msk.msrb.mxu3 %vm544_vm1, %v608_v27 }
 0x226   : > { %1788 = vmatmul.msk.f32.vlgmr.msrb.gmra.mxu3 %vm544_vm1, %v606_v29 }
 0x227   : > { %710 = vmatpush.msra.mxu3 %v602_v28 }
 0x229   : > { %1796 = vmatpush.xpose.msk.msrb.mxu3 %vm544_vm1, %v806_v11 }
 0x22a   : > { %v716_v35 = vpop.permute.xlu1 %715 }
 0x22f   : > { %717 = vrot.lane.b32.xlu2 %v2201_v5, %s2638_s16  ;;  %s2661_s16 = smov 48  }
 0x237   : > { %843 = vrot.lane.b32.xlu2 %v2201_v5, %s2636_s20  ;;  %s2654_s20 = smov 88  }
 0x28a   : > { %v578_v30 = vpop.xlane.xlu2 %577 }
 0x28b   : > { %1931 = vrcp.f32 %v578_v30 }
 0x291   : > { %v1932_v31 = vpop.eup %1931 }
 0x292   : > { %v580_v33 = vmul.f32 %v1932_v31, %v1930_v25  ;;  %v718_v34 = vpop.permute.xlu2 %717 }
 0x293   : > { %1792 = vmatpush.xpose.msk.msra.mxu0 %vm544_vm1, %v718_v34  ;;  %v939_v34 = vld [vmem:[%s2618_s7 + $0x18] sm:$0xff] }
 0x294   : > { %1791 = vmatmul.msk.f32.vlgmr.msra.gmra.mxu3 %vm544_vm1, %v580_v33 }
 0x296   : > { %1793 = vmatmul.msk.f32.vlgmr.msra.gmra.mxu0 %vm544_vm1, %v716_v35  ;;  %v938_v35 = vld [vmem:[%s2618_s7 + $0x10] sm:$0xff] }
 0x297   : > { %862 = vmatpush.msrb.mxu0 %v540_v32 }
 0x29a   : > { %v844_v36 = vpop.permute.xlu2 %843 }
 0x29c   : > { %1797 = vmatmul.msk.f32.vlgmr.msrb.gmra.mxu3 %vm544_vm1, %v804_v12 }
 0x29e   : > { %1798 = vmatmul.msk.f32.vlgmr.msrb.gmra.mxu0 %vm544_vm1, %v844_v36  ;;  %v937_v36 = vld [vmem:[%s2618_s7 + $0x8] sm:$0xff] }
 0x2a9   : > { %v630_v37 = vpop.f32.mrf.mxu3 }
 0x2aa   : > { %v631_v38 = vadd.f32 %v630_v37, %v2237_v15  ;;  %v936_v37 = vld [vmem:[%s2618_s7] sm:$0xff] }
 0x2ac   : > { %v633_v39 = vmul.f32 0.17677669, %v631_v38  ;;  %v983_v38 = vld [vmem:[%s2620_s9 + $0x78] sm:$0xff] }
 0x2ad   : > { %988 = vmatpush.msra.mxu3 %v983_v38 }
 0x2ae   : > { %v634_v40 = vsel %vm544_vm1, %v633_v39, -inf }
 0x2af   : > { %635 = vmax.xlane.f32.xlu1 %v634_v40  ;;  %v981_v40 = vld [vmem:[%s2620_s9 + $0x68] sm:$0xff] }
 0x313   : > { %v740_v41 = vpop.f32.mrf.mxu0 }
 0x314   : > { %v741_v42 = vadd.f32 %v740_v41, %v2237_v15 }
 0x316   : > { %v743_v43 = vmul.f32 0.17677669, %v741_v42 }
 0x317   : > { %v712_v44 = vpop.f32.mrf.mxu3 }
 0x318   : > { %v744_v45 = vsel %vm544_vm1, %v743_v43, -inf }
 0x319   : > { %745 = vmax.xlane.f32.xlu2 %v744_v45  ;;  %v979_v45 = vld [vmem:[%s2620_s9 + $0x58] sm:$0xff] }
 0x31b   : > { %v864_v46 = vpop.f32.mrf.mxu0 }
 0x31c   : > { %885 = vmatpush.msrb.mxu2 %v864_v46  ;;  %v978_v46 = vld [vmem:[%s2620_s9 + $0x50] sm:$0xff] }
 0x31f   : > { %v828_v47 = vpop.f32.mrf.mxu3 }
 0x320   : > { %v829_v48 = vadd.f32 %v828_v47, %v2237_v15  ;;  %v977_v47 = vld [vmem:[%s2620_s9 + $0x48] sm:$0xff] }
 0x322   : > { %v831_v49 = vmul.f32 0.17677669, %v829_v48  ;;  %v636_v50 = vpop.xlane.xlu1 %635  ;;  %v976_v48 = vld [vmem:[%s2620_s9 + $0x40] sm:$0xff] }
 0x323   : > { %v637_v51 = vsub.f32 %v633_v39, %v636_v50  ;;  %v982_v39 = vld [vmem:[%s2620_s9 + $0x70] sm:$0xff]  ;;  %v975_v50 = vld [vmem:[%s2620_s9 + $0x38] sm:$0xff] }
 0x324   : > { %v832_v52 = vsel %vm544_vm1, %v831_v49, -inf  ;;  %989 = vmatpush.msra.mxu3 %v982_v39 }
 0x325   : > { %v638_v53 = vmul.f32 1.442695, %v637_v51  ;;  %833 = vmax.xlane.f32.xlu0 %v832_v52  ;;  %v974_v52 = vld [vmem:[%s2620_s9 + $0x30] sm:$0xff] }
 0x326   : > { %990 = vmatpush.msra.mxu3 %v981_v40 }
 0x327   : > { %1933 = vpow2.f32 %v638_v53 }
 0x32d   : > { %v1934_v54 = vpop.eup %1933 }
 0x32e   : > { %v640_v55 = vsel %vm544_vm1, %v1934_v54, 0.0 }
 0x32f   : > { %641 = vadd.xlane.f32.xlu1 %v640_v55 }
 0x38c   : > { %v746_v56 = vpop.xlane.xlu2 %745 }
 0x38d   : > { %v747_v57 = vsub.f32 %v743_v43, %v746_v56  ;;  %v980_v43 = vld [vmem:[%s2620_s9 + $0x60] sm:$0xff] }
 0x38e   : > { %991 = vmatpush.msra.mxu3 %v980_v43  ;;  %v972_v56 = vld [vmem:[%s2620_s9 + $0x20] sm:$0xff] }
 0x38f   : > { %v748_v58 = vmul.f32 1.442695, %v747_v57 }
 0x390   : > { %992 = vmatpush.msra.mxu3 %v979_v45  ;;  %v1807_v45 = vld [vmem:[%s2614_s3 + $0x28] sm:$0xff] }
 0x391   : > { %1935 = vpow2.f32 %v748_v58  ;;  %v971_v58 = vld [vmem:[%s2620_s9 + $0x18] sm:$0xff] }
 0x392   : > { %993 = vmatpush.msra.mxu3 %v978_v46 }
 0x394   : > { %994 = vmatpush.msra.mxu3 %v977_v47 }
 0x396   : > { %995 = vmatpush.msra.mxu3 %v976_v48 }
 0x397   : > { %v1936_v59 = vpop.eup %1935 }
 0x398   : > { %v834_v60 = vpop.xlane.xlu0 %833  ;;  %v750_v61 = vsel %vm544_vm1, %v1936_v59, 0.0  ;;  %996 = vmatpush.msra.mxu3 %v975_v50 }
 0x399   : > { %v835_v62 = vsub.f32 %v831_v49, %v834_v60  ;;  %751 = vadd.xlane.f32.xlu0 %v750_v61  ;;  %v1916_v60 = vld [vmem:[%s2616_s5] ss:$0 sm:$0xff] }
 0x39a   : > { %997 = vmatpush.msra.mxu3 %v974_v52 }
 0x39b   : > { %v836_v63 = vmul.f32 1.442695, %v835_v62 }
 0x39d   : > { %1937 = vpow2.f32 %v836_v63  ;;  %v1917_v63 = vld [vmem:[%s2617_s6] ss:$0 sm:$0xff] }
 0x3a2   : > { %v642_v0 = vpop.xlane.xlu1 %641 }
 0x3a3   : > { %v1938_v1 = vpop.eup %1937  ;;  %1939 = vrcp.f32 %v642_v0 }
 0x3a4   : > { %v838_v2 = vsel %vm544_vm1, %v1938_v1, 0.0 }
 0x3a5   : > { %839 = vadd.xlane.f32.xlu2 %v838_v2  ;;  %v970_v2 = vld [vmem:[%s2620_s9 + $0x10] sm:$0xff] }
 0x3a9   : > { %v1940_v3 = vpop.eup %1939 }
 0x3aa   : > { %v644_v5 = vmul.f32 %v1940_v3, %v1934_v54  ;;  %v973_v54 = vld [vmem:[%s2620_s9 + $0x28] sm:$0xff] }
 0x3ab   : > { %998 = vmatpush.msra.mxu3 %v973_v54  ;;  %v969_v3 = vld [vmem:[%s2620_s9 + $0x8] sm:$0xff] }
 0x3ac   : > { %1790 = vmatmul.msk.f32.vlgmr.msrb.gmra.mxu1 %vm544_vm1, %v644_v5  ;;  %v968_v5 = vld [vmem:[%s2620_s9] sm:$0xff] }
 0x3ad   : > { %959 = vmatpush.msrb.mxu1 %v939_v34  ;;  %999 = vmatpush.msra.mxu3 %v972_v56  ;;  %v1920_v34 = vld [vmem:[%s2622_s11] ss:$0 sm:$0xff] }
 0x3af   : > { %960 = vmatpush.msrb.mxu1 %v938_v35  ;;  %1000 = vmatpush.msra.mxu3 %v971_v58 }
 0x3b1   : > { %961 = vmatpush.msrb.mxu1 %v937_v36  ;;  %1001 = vmatpush.msra.mxu3 %v970_v2 }
 0x3b3   : > { %962 = vmatpush.msrb.mxu1 %v936_v37  ;;  %1002 = vmatpush.msra.mxu3 %v969_v3  ;;  %v1921_v37 = vld [vmem:[%s2623_s12] ss:$0 sm:$0xff] }
 0x3b5   : > { %1003 = vmatpush.msra.mxu3 %v968_v5 }
 0x40c   : > { %v752_v6 = vpop.xlane.xlu0 %751 }
 0x40d   : > { %1941 = vrcp.f32 %v752_v6  ;;  %v1918_v6 = vld [vmem:[%s2619_s8] ss:$0 sm:$0xff] }
 0x413   : > { %v1942_v7 = vpop.eup %1941 }
 0x414   : > { %v754_v8 = vmul.f32 %v1942_v7, %v1936_v59 }
 0x416   : > { %1795 = vmatmul.msk.f32.vlgmr.msra.gmra.mxu1 %vm544_vm1, %v754_v8 }
 0x418   : > { %v840_v9 = vpop.xlane.xlu2 %839 }
 0x419   : > { %1943 = vrcp.f32 %v840_v9 }
 0x41a   : > { %1945 = vrcp.f32 %v2046_v23  ;;  %v1802_v23 = vld [vmem:[%s2613_s2 + $0x28] sm:$0xff] }
 0x41f   : > { %v1944_v10 = vpop.eup %1943 }
 0x420   : > { %v842_v11 = vmul.f32 %v1944_v10, %v1938_v1  ;;  %v1946_v24 = vpop.eup %1945  ;;  %v1919_v10 = vld [vmem:[%s2621_s10] ss:$0 sm:$0xff] }
 0x421   : > { %v903_v25 = vmul.f32 32.0, %v1946_v24  ;;  %vm907_vm2 = vweird.f32 %v1946_v24 }
 0x422   : > { %1799 = vmatmul.msk.f32.vlgmr.msrb.gmra.mxu2 %vm544_vm1, %v842_v11 }
 0x423   : > { %v904_v26 = vsub.f32 1.0, %v903_v25 }
 0x425   : > { %v905_v27 = vmul.f32 %v1946_v24, %v904_v26 }
 0x427   : > { %v906_v28 = vadd.f32 %v1946_v24, %v905_v27 }
 0x429   : > { %v689_v12 = vpop.f32.mrf.mxu1  ;;  %v2278_v29 = vsel %vm907_vm2, %v1946_v24, %v906_v28  ;;  %v1801_v24 = vld [vmem:[%s2613_s2 + $0x20] sm:$0xff] }
 0x42a   : > { %v713_v14 = vadd.f32 %v712_v44, %v689_v12 }
 0x493   : > { %v799_v13 = vpop.f32.mrf.mxu1 }
 0x494   : > { %v802_v16 = vadd.f32 %v799_v13, %v713_v14 }
 0x4a5   : > { %v887_v18 = vpop.f32.mrf.mxu2 }
 0x4a6   : > { %v890_v19 = vadd.f32 %v887_v18, %v802_v16 }
 0x4a8   : > { %v895_v20 = vadd.f32 %v1915_v17, %v890_v19 }
 0x4aa   : > { %v896_v21 = vadd.f32 %v895_v20, %v2197_v4 }
 0x4ac   : > { %v899_v22 = vsel %vm513_vm0, %v896_v21, 0.0 }
 0x4ad   : > { %900 = vadd.xlane.f32.xlu1 %v899_v22  ;;  %v1803_v22 = vld [vmem:[%s2613_s2 + $0x30] sm:$0xff] }
 0x520   : > { %v901_v30 = vpop.xlane.xlu1 %900 }
 0x521   : > { %v909_v31 = vmul.f32 %v2278_v29, %v901_v30 }
 0x523   : > { %v910_v32 = vsub.f32 %v896_v21, %v909_v31  ;;  %v1804_v21 = vld [vmem:[%s2613_s2 + $0x38] sm:$0xff] }
 0x524   : > { %1061 = vmatpush.msra.mxu0 %v1804_v21 }
 0x525   : > { %v911_v33 = vmul.f32 %v910_v32, %v910_v32 }
 0x526   : > { %1062 = vmatpush.msra.mxu0 %v1803_v22 }
 0x527   : > { %v912_v4 = vsel %vm513_vm0, %v911_v33, 0.0 }
 0x528   : > { %913 = vadd.xlane.f32.xlu2 %v912_v4  ;;  %1063 = vmatpush.msra.mxu0 %v1802_v23 }
 0x52a   : > { %1064 = vmatpush.msra.mxu0 %v1801_v24  ;;  %v1808_v24 = vld [vmem:[%s2614_s3 + $0x30] sm:$0xff] }
 0x59b   : > { %v914_v41 = vpop.xlane.xlu2 %913 }
 0x59c   : > { %v915_v42 = vmul.f32 %v914_v41, %v2278_v29  ;;  %v1806_v41 = vld [vmem:[%s2614_s3 + $0x20] sm:$0xff] }
 0x59d   : > { %1132 = vmatpush.msra.mxu1 %v1806_v41 }
 0x59e   : > { %v916_v44 = vadd.f32 1e-05, %v915_v42 }
 0x5a0   : > { %1947 = vrsqrt.f32 %v916_v44  ;;  %vm923_vm4 = vweird.f32 %v916_v44 }
 0x5a6   : > { %v1948_v49 = vpop.eup %1947 }
 0x5a7   : > { %v918_v51 = vmul.f32 %v1948_v49, %v916_v44  ;;  %vm924_vm3 = vweird.f32 %v1948_v49 }
 0x5a8   : > { %vm925_vm5 = vmor %vm923_vm4, %vm924_vm3 }
 0x5a9   : > { %v919_v53 = vmul.f32 %v1948_v49, %v918_v51 }
 0x5ab   : > { %v920_v55 = vmul.f32 0.5, %v919_v53 }
 0x5ad   : > { %v921_v57 = vsub.f32 1.5, %v920_v55 }
 0x5af   : > { %v922_v59 = vmul.f32 %v1948_v49, %v921_v57 }
 0x5b1   : > { %v926_v61 = vsel %vm925_vm5, %v1948_v49, %v922_v59 }
 0x5b2   : > { %v927_v62 = vmul.f32 %v926_v61, %v910_v32 }
 0x5b4   : > { %v931_v0 = vmul.f32 %v1916_v60, %v927_v62 }
 0x5b6   : > { %v935_v1 = vadd.f32 %v1917_v63, %v931_v0 }
 0x5b8   : > { %1800 = vmatmul.msk.f32.vlgmr.msrb.gmra.mxu1 %vm513_vm0, %v935_v1 }
 0x635   : > { %v964_v7 = vpop.f32.mrf.mxu1 }
 0x636   : > { %v965_v8 = vadd.f32 %v1918_v6, %v964_v7 }
 0x638   : > { %v967_v9 = vmax.f32 %v965_v8, 0.0 }
 0x63a   : > { %1004 = vmatmul.f32.vlgmr.msra.gmra.mxu3 %v967_v9 }
 0x6bd   : > { %v1005_v11 = vpop.f32.mrf.mxu3 }
 0x6be   : > { %v1006_v12 = vadd.f32 %v1919_v10, %v1005_v11 }
 0x6c0   : > { %v1008_v13 = vadd.f32 %v1006_v12, %v935_v1 }
 0x6c2   : > { %v1011_v14 = vsel %vm513_vm0, %v1008_v13, 0.0 }
 0x6c3   : > { %1012 = vadd.xlane.f32.xlu0 %v1011_v14 }
 0x736   : > { %v1013_v16 = vpop.xlane.xlu0 %1012 }
 0x737   : > { %v1014_v17 = vmul.f32 %v1013_v16, %v2278_v29 }
 0x739   : > { %v1015_v18 = vsub.f32 %v1008_v13, %v1014_v17 }
 0x73b   : > { %v1016_v19 = vmul.f32 %v1015_v18, %v1015_v18 }
 0x73d   : > { %v1017_v20 = vsel %vm513_vm0, %v1016_v19, 0.0 }
 0x73e   : > { %1018 = vadd.xlane.f32.xlu1 %v1017_v20 }
 0x7b1   : > { %v1019_v25 = vpop.xlane.xlu1 %1018 }
 0x7b2   : > { %v1020_v26 = vmul.f32 %v1019_v25, %v2278_v29 }
 0x7b4   : > { %v1021_v27 = vadd.f32 1e-05, %v1020_v26 }
 0x7b6   : > { %1949 = vrsqrt.f32 %v1021_v27  ;;  %vm1028_vm7 = vweird.f32 %v1021_v27 }
 0x7bc   : > { %v1950_v28 = vpop.eup %1949 }
 0x7bd   : > { %v1023_v30 = vmul.f32 %v1950_v28, %v1021_v27  ;;  %vm1029_vm6 = vweird.f32 %v1950_v28 }
 0x7be   : > { %vm1030_vm8 = vmor %vm1028_vm7, %vm1029_vm6 }
 0x7bf   : > { %v1024_v31 = vmul.f32 %v1950_v28, %v1023_v30  ;;  %v1809_v30 = vld [vmem:[%s2614_s3 + $0x38] sm:$0xff] }
 0x7c1   : > { %v1025_v32 = vmul.f32 0.5, %v1024_v31 }
 0x7c3   : > { %v1026_v33 = vsub.f32 1.5, %v1025_v32 }
 0x7c5   : > { %v1027_v4 = vmul.f32 %v1950_v28, %v1026_v33 }
 0x7c7   : > { %v1031_v35 = vsel %vm1030_vm8, %v1950_v28, %v1027_v4 }
 0x7c8   : > { %v1032_v36 = vmul.f32 %v1031_v35, %v1015_v18 }
 0x7ca   : > { %v1036_v38 = vmul.f32 %v1920_v34, %v1032_v36 }
 0x7cc   : > { %v2378_v39 = vadd.f32 %v1921_v37, %v1036_v38 }
 0x7ce   : > { %1805 = vmatmul.msk.f32.vlgmr.msra.gmra.mxu0 %vm513_vm0, %v2378_v39 }
 0x84b   : > { %v1066_v40 = vpop.f32.mrf.mxu0 }
 0x84c   : > { %1075 = vrot.lane.b32.xlu1 %v1066_v40, %s2652_s26  ;;  %1137 = vrot.lane.b32.xlu0 %v1066_v40, %s2653_s30  ;;  %s1991_s30 = scalar_lea.hbm %s2626_s15, 64 }
 0x84d   : > { %1139 = vrot.lane.b32.xlu2 %v1066_v40, %s2654_s20 }
 0x854   : > { %1247 = vrot.lane.b32.xlu1 %v1066_v40, %s2655_s25  ;;  %1177 = vrot.lane.b32.xlu0 %v1066_v40, %s2656_s17 }
 0x855   : > { %1249 = vrot.lane.b32.xlu2 %v1066_v40, %s2657_s23  ;;  %s496_s23 = sand.u32 1, %s2025_s19  }
 0x85c   : > { %1337 = vrot.lane.b32.xlu0 %v1066_v40, %s2658_s0 }
 0x85d   : > { %1335 = vrot.lane.b32.xlu2 %v1066_v40, %s2659_s24 }
 0x865   : > { %1113 = vrot.lane.b32.xlu2 %v1066_v40, %s2660_s27  ;;  %s1780_s27 = sshll.u32 %s496_s23, 5 }
 0x866   : > { %s498_s26 = scalar_lea.vmem [#allocation2], %s1780_s27 }
 0x86d   : > { %1287 = vrot.lane.b32.xlu2 %v1066_v40, %s2661_s16  ;;  %s1863_s16 = sshll.u32 %s2148_s22, 5  ;;  %s1689_s22 = scalar_lea.sflag [#allocation3], %s496_s23 }
 0x86e   : > { %s1700_s25 = scalar_lea.hbm %s2626_s15, %s1863_s16 }
 0x86f   : > { %s1704_s17 = sshll.u32 %s1700_s25, 4  ;;  %s1705_s17 = int_to_ptr.hbm [resolvable:$true] %s1704_s17 }
 0x870   : > { %s1985_s0 = sshra.s32 %s1705_s17, 4  ;;  %s1986_s0 = int_to_ptr.hbm [resolvable:$true] %s1985_s0 }
 0x871   : > { %s1987_s24 = scalar_lea.hbm %s1986_s0, 32  ;;  %p1992_p0 = scmp.lt.s32.totalorder %s1986_s0, %s2626_s15 }
 0x872   : > { %p1988_p11 = scmp.ne.s32.totalorder %s1986_s0, %s1987_s24  ;;  %p1993_p1 = scmp.lt.s32.totalorder %s1991_s30, %s1987_s24 }
 0x874   : > { %p1989_p12 = pnand %p1988_p11, %p2165_p5  ;;  %p1994_p2 = por %p1993_p1, %p1992_p0 }
 0x875   : > { %1375 = vrot.lane.b32.xlu2 %v1066_v40, %s2662_s1  ;;  %s1702_s1 = sshll.u32 %s498_s26, 4  ;;  %s1703_s1 = int_to_ptr.vmem [resolvable:$true] %s1702_s1 }
 0x876   : > { %p1990_p13 = pneg %p1989_p12 }
 0x878   : > { %p1995_p3 = pnand %p1994_p2, %p1990_p13 }
 0x8a7   : > { %v1140_v42 = vpop.permute.xlu2 %1139 }
 0x8a8   : > { %1813 = vmatpush.xpose.msk.msrb.mxu0 %vm544_vm1, %v1140_v42 }
 0x8af   : > { %v1250_v43 = vpop.permute.xlu2 %1249 }
 0x8b7   : > { %v1336_v44 = vpop.permute.xlu2 %1335 }
 0x8be   : > { %v1076_v46 = vpop.permute.xlu1 %1075  ;;  %v1138_v47 = vpop.permute.xlu0 %1137 }
 0x8bf   : > { %v1114_v48 = vpop.permute.xlu2 %1113  ;;  %1810 = vmatpush.xpose.msk.msra.mxu2 %vm544_vm1, %v1076_v46  ;;  %1814 = vmatmul.msk.f32.vlgmr.msrb.gmra.mxu0 %vm544_vm1, %v1138_v47 }
 0x8c0   : > { %1812 = vmatmul.msk.f32.vlgmr.msra.gmra.mxu1 %vm544_vm1, %v1114_v48 }
 0x8c2   : > { %1811 = vmatmul.msk.f32.vlgmr.msra.gmra.mxu2 %vm544_vm1, %v1066_v40 }
 0x8c3   : > { %1196 = vmatpush.msrb.mxu2 %v1807_v45 }
 0x8c5   : > { %1818 = vmatpush.xpose.msk.msra.mxu2 %vm544_vm1, %v1250_v43 }
 0x8c6   : > { %v1178_v49 = vpop.permute.xlu0 %1177  ;;  %v1248_v51 = vpop.permute.xlu1 %1247 }
 0x8c7   : > { %v1288_v3 = vpop.permute.xlu2 %1287 }
 0x8ca   : > { %1815 = vmatmul.msk.f32.vlgmr.msrb.gmra.mxu2 %vm544_vm1, %v1178_v49 }
 0x8ce   : > { %v1338_v50 = vpop.permute.xlu0 %1337 }
 0x8cf   : > { %1822 = vmatpush.xpose.msk.msrb.mxu2 %vm544_vm1, %v1338_v50  ;;  %v1376_v6 = vpop.permute.xlu2 %1375 }
 0x8d2   : > { %1819 = vmatmul.msk.f32.vlgmr.msra.gmra.mxu2 %vm544_vm1, %v1248_v51  ;;  %v1922_v51 = vld [vmem:[%s2615_s4 + $0x1] ss:$0 sm:$0xff] }
 0x8da   : > { %1823 = vmatmul.msk.f32.vlgmr.msrb.gmra.mxu2 %vm544_vm1, %v1336_v44 }
 0x93c   : > { %v1162_v52 = vpop.f32.mrf.mxu0 }
 0x93d   : > { %v1134_v53 = vpop.f32.mrf.mxu1  ;;  %v1163_v54 = vadd.f32 %v1162_v52, %v2237_v15 }
 0x93e   : > { %1242 = vmatpush.msra.mxu0 %v1134_v53 }
 0x93f   : > { %v1165_v55 = vmul.f32 0.17677669, %v1163_v54 }
 0x941   : > { %v1166_v56 = vsel %vm544_vm1, %v1165_v55, -inf }
 0x942   : > { %1167 = vmax.xlane.f32.xlu1 %v1166_v56 }
 0x945   : > { %v1098_v57 = vpop.f32.mrf.mxu2 }
 0x946   : > { %v1099_v58 = vadd.f32 %v1098_v57, %v2237_v15 }
 0x948   : > { %v1101_v59 = vmul.f32 0.17677669, %v1099_v58 }
 0x94a   : > { %v1102_v60 = vsel %vm544_vm1, %v1101_v59, -inf }
 0x94b   : > { %1103 = vmax.xlane.f32.xlu2 %v1102_v60 }
 0x94d   : > { %v1198_v61 = vpop.f32.mrf.mxu2 }
 0x94e   : > { %1219 = vmatpush.msrb.mxu1 %v1198_v61 }
 0x950   : > { %1306 = vmatpush.msra.mxu1 %v1808_v24  ;;  %v1923_v24 = vld [vmem:[%s2616_s5 + $0x1] ss:$0 sm:$0xff] }
 0x955   : > { %v1272_v62 = vpop.f32.mrf.mxu2 }
 0x956   : > { %v1273_v12 = vadd.f32 %v1272_v62, %v2237_v15  ;;  %v1832_v62 = vld [vmem:[%s2618_s7 + $0x38] sm:$0xff] }
 0x958   : > { %v1275_v16 = vmul.f32 0.17677669, %v1273_v12  ;;  %v1843_v12 = vld [vmem:[%s2620_s9 + $0xc0] sm:$0xff] }
 0x95a   : > { %v1276_v18 = vsel %vm544_vm1, %v1275_v16, -inf }
 0x95d   : > { %v1360_v63 = vpop.f32.mrf.mxu2 }
 0x95e   : > { %v1361_v0 = vadd.f32 %v1360_v63, %v2237_v15  ;;  %v1830_v63 = vld [vmem:[%s2618_s7 + $0x28] sm:$0xff] }
 0x960   : > { %v1363_v1 = vmul.f32 0.17677669, %v1361_v0  ;;  %v1829_v0 = vld [vmem:[%s2618_s7 + $0x20] sm:$0xff] }
 0x962   : > { %v1364_v2 = vsel %vm544_vm1, %v1363_v1, -inf }
 0x963   : > { %1365 = vmax.xlane.f32.xlu1 %v1364_v2  ;;  %v1849_v2 = vld [vmem:[%s2620_s9 + $0xf0] sm:$0xff] }
 0x9b5   : > { %v1168_v5 = vpop.xlane.xlu1 %1167 }
 0x9b6   : > { %v1169_v7 = vsub.f32 %v1165_v55, %v1168_v5 }
 0x9b8   : > { %v1170_v8 = vmul.f32 1.442695, %v1169_v7  ;;  %v1847_v7 = vld [vmem:[%s2620_s9 + $0xe0] sm:$0xff] }
 0x9ba   : > { %1951 = vpow2.f32 %v1170_v8 }
 0x9be   : > { %v1104_v9 = vpop.xlane.xlu2 %1103 }
 0x9bf   : > { %v1105_v10 = vsub.f32 %v1101_v59, %v1104_v9  ;;  %v1846_v9 = vld [vmem:[%s2620_s9 + $0xd8] sm:$0xff] }
 0x9c0   : > { %v1952_v11 = vpop.eup %1951 }
 0x9c1   : > { %v1106_v13 = vmul.f32 1.442695, %v1105_v10  ;;  %v1172_v14 = vsel %vm544_vm1, %v1952_v11, 0.0  ;;  %v1845_v10 = vld [vmem:[%s2620_s9 + $0xd0] sm:$0xff] }
 0x9c2   : > { %1173 = vadd.xlane.f32.xlu0 %v1172_v14  ;;  %v1842_v14 = vld [vmem:[%s2620_s9 + $0xb8] sm:$0xff] }
 0x9c3   : > { %1953 = vpow2.f32 %v1106_v13 }
 0x9c9   : > { %v1954_v17 = vpop.eup %1953 }
 0x9ca   : > { %1277 = vmax.xlane.f32.xlu0 %v1276_v18  ;;  %v1108_v19 = vsel %vm544_vm1, %v1954_v17, 0.0 }
 0x9cb   : > { %1109 = vadd.xlane.f32.xlu1 %v1108_v19  ;;  %v1840_v19 = vld [vmem:[%s2620_s9 + $0xa8] sm:$0xff] }
 0x9d6   : > { %v1366_v20 = vpop.xlane.xlu1 %1365 }
 0x9d7   : > { %v1367_v21 = vsub.f32 %v1363_v1, %v1366_v20  ;;  %v1850_v1 = vld [vmem:[%s2620_s9 + $0xf8] sm:$0xff] }
 0x9d8   : > { %1520 = vmatpush.msra.mxu2 %v1850_v1 }
 0x9d9   : > { %v1368_v22 = vmul.f32 1.442695, %v1367_v21  ;;  %v1839_v21 = vld [vmem:[%s2620_s9 + $0xa0] sm:$0xff] }
 0x9da   : > { %1521 = vmatpush.msra.mxu2 %v1849_v2 }
 0x9db   : > { %1955 = vpow2.f32 %v1368_v22 }
 0x9e1   : > { %v1956_v23 = vpop.eup %1955 }
 0x9e2   : > { %v1370_v15 = vsel %vm544_vm1, %v1956_v23, 0.0 }
 0x9e3   : > { %1371 = vadd.xlane.f32.xlu0 %v1370_v15 }
 0xa35   : > { %v1174_v25 = vpop.xlane.xlu0 %1173 }
 0xa36   : > { %1957 = vrcp.f32 %v1174_v25 }
 0xa3c   : > { %v1958_v26 = vpop.eup %1957 }
 0xa3d   : > { %v1176_v27 = vmul.f32 %v1958_v26, %v1952_v11  ;;  %v1278_v28 = vpop.xlane.xlu0 %1277  ;;  %v1844_v11 = vld [vmem:[%s2620_s9 + $0xc8] sm:$0xff] }
 0xa3e   : > { %v1279_v31 = vsub.f32 %v1275_v16, %v1278_v28  ;;  %v1110_v32 = vpop.xlane.xlu1 %1109 }
 0xa3f   : > { %1959 = vrcp.f32 %v1110_v32  ;;  %1816 = vmatmul.msk.f32.vlgmr.msrb.gmra.mxu1 %vm544_vm1, %v1176_v27  ;;  %v1924_v27 = vld [vmem:[%s2617_s6 + $0x1] ss:$0 sm:$0xff]  ;;  %v1836_v32 = vld [vmem:[%s2620_s9 + $0x88] sm:$0xff] }
 0xa40   : > { %v1280_v33 = vmul.f32 1.442695, %v1279_v31  ;;  %1394 = vmatpush.msrb.mxu1 %v1809_v30  ;;  %v1837_v31 = vld [vmem:[%s2620_s9 + $0x90] sm:$0xff] }
 0xa42   : > { %1961 = vpow2.f32 %v1280_v33  ;;  %v1835_v33 = vld [vmem:[%s2620_s9 + $0x80] sm:$0xff] }
 0xa45   : > { %v1960_v4 = vpop.eup %1959 }
 0xa46   : > { %v1112_v34 = vmul.f32 %v1960_v4, %v1954_v17  ;;  %v1841_v17 = vld [vmem:[%s2620_s9 + $0xb0] sm:$0xff]  ;;  %v1925_v4 = vld [vmem:[%s2619_s8 + $0x1] ss:$0 sm:$0xff] }
 0xa47   : > { %1820 = vmatmul.msk.f32.vlgmr.msra.gmra.mxu1 %vm544_vm1, %v1288_v3  ;;  %v1848_v3 = vld [vmem:[%s2620_s9 + $0xe8] sm:$0xff] }
 0xa48   : > { %v1962_v35 = vpop.eup %1961  ;;  %1817 = vmatmul.msk.f32.vlgmr.msra.gmra.mxu0 %vm544_vm1, %v1112_v34  ;;  %1522 = vmatpush.msra.mxu2 %v1848_v3 }
 0xa49   : > { %v1282_v36 = vsel %vm544_vm1, %v1962_v35, 0.0 }
 0xa4a   : > { %1283 = vadd.xlane.f32.xlu1 %v1282_v36  ;;  %1523 = vmatpush.msra.mxu2 %v1847_v7 }
 0xa4c   : > { %1524 = vmatpush.msra.mxu2 %v1846_v9 }
 0xa4e   : > { %1525 = vmatpush.msra.mxu2 %v1845_v10 }
 0xa4f   : > { %1824 = vmatmul.msk.f32.vlgmr.msrb.gmra.mxu1 %vm544_vm1, %v1376_v6 }
 0xa50   : > { %1526 = vmatpush.msra.mxu2 %v1844_v11  ;;  %v1928_v11 = vld [vmem:[%s2623_s12 + $0x1] ss:$0 sm:$0xff] }
 0xa52   : > { %1527 = vmatpush.msra.mxu2 %v1843_v12 }
 0xa54   : > { %1528 = vmatpush.msra.mxu2 %v1842_v14  ;;  %v1591_v14 = vld [vmem:[%s2625_s14] sm:$0xf] }
 0xa56   : > { %v1372_v40 = vpop.xlane.xlu0 %1371  ;;  %1529 = vmatpush.msra.mxu2 %v1841_v17  ;;  %v1595_v17 = vperm.slane %v1591_v14, 2 }
 0xa58   : > { %1530 = vmatpush.msra.mxu2 %v1840_v19 }
 0xa5a   : > { %1531 = vmatpush.msra.mxu2 %v1839_v21 }
 0xabc   : > { %v1221_v37 = vpop.f32.mrf.mxu1 }
 0xabd   : > { %v1284_v38 = vpop.xlane.xlu1 %1283 }
 0xabe   : > { %1963 = vrcp.f32 %v1284_v38 }
 0xabf   : > { %1965 = vrcp.f32 %v1372_v40 }
 0xac4   : > { %v1964_v41 = vpop.eup %1963  ;;  %v1308_v42 = vpop.f32.mrf.mxu1 }
 0xac5   : > { %v1286_v43 = vmul.f32 %v1964_v41, %v1962_v35  ;;  %1329 = vmatpush.msrb.mxu0 %v1308_v42  ;;  %v1966_v44 = vpop.eup %1965  ;;  %v1244_v47 = vpop.f32.mrf.mxu0 }
 0xac6   : > { %v1374_v45 = vmul.f32 %v1966_v44, %v1956_v23  ;;  %v1245_v49 = vadd.f32 %v1244_v47, %v1221_v37  ;;  %v1838_v23 = vld [vmem:[%s2620_s9 + $0x98] sm:$0xff]  ;;  %v1926_v37 = vld [vmem:[%s2621_s10 + $0x1] ss:$0 sm:$0xff] }
 0xac7   : > { %1821 = vmatmul.msk.f32.vlgmr.msrb.gmra.mxu0 %vm544_vm1, %v1286_v43  ;;  %1532 = vmatpush.msra.mxu2 %v1838_v23  ;;  %v1596_v23 = vperm.slane %v1591_v14, 3 }
 0xac8   : > { %1489 = vmatpush.msra.mxu0 %v1832_v62 }
 0xac9   : > { %1533 = vmatpush.msra.mxu2 %v1837_v31 }
 0xacb   : > { %1534 = vmatpush.msra.mxu2 %v1836_v32 }
 0xacc   : > { %v1396_v46 = vpop.f32.mrf.mxu1 }
 0xacd   : > { %1417 = vmatpush.msrb.mxu3 %v1396_v46  ;;  %1535 = vmatpush.msra.mxu2 %v1835_v33 }
 0xace   : > { %1825 = vmatmul.msk.f32.vlgmr.msrb.gmra.mxu3 %vm544_vm1, %v1374_v45 }
 0xb44   : > { %v1331_v48 = vpop.f32.mrf.mxu0 }
 0xb45   : > { %v1334_v50 = vadd.f32 %v1331_v48, %v1245_v49  ;;  %v1587_v48 = vld [vmem:[%s2624_s13 + $0x60] sm:$0xff]  ;;  %v1588_v49 = vld [vmem:[%s2624_s13 + $0x68] sm:$0xff] }
 0xb46   : > { %1616 = vmatpush.msra.mxu1 %v1587_v48  ;;  %1636 = vmatpush.msra.mxu3 %v1588_v49 }
 0xb51   : > { %v1419_v52 = vpop.f32.mrf.mxu3 }
 0xb52   : > { %v1422_v53 = vadd.f32 %v1419_v52, %v1334_v50  ;;  %v1589_v50 = vld [vmem:[%s2624_s13 + $0x70] sm:$0xff]  ;;  %v1584_v52 = vld [vmem:[%s2624_s13 + $0x48] sm:$0xff] }
 0xb53   : > { %1637 = vmatpush.msra.mxu3 %v1584_v52 }
 0xb54   : > { %v1428_v54 = vadd.f32 %v1922_v51, %v1422_v53  ;;  %v1583_v51 = vld [vmem:[%s2624_s13 + $0x40] sm:$0xff]  ;;  %v1585_v53 = vld [vmem:[%s2624_s13 + $0x50] sm:$0xff] }
 0xb55   : > { %1617 = vmatpush.msra.mxu1 %v1583_v51 }
 0xb56   : > { %v1429_v55 = vadd.f32 %v1428_v54, %v2378_v39  ;;  %v1831_v39 = vld [vmem:[%s2618_s7 + $0x30] sm:$0xff]  ;;  %v1579_v54 = vld [vmem:[%s2624_s13 + $0x20] sm:$0xff] }
 0xb57   : > { %1490 = vmatpush.msra.mxu0 %v1831_v39  ;;  %1618 = vmatpush.msra.mxu1 %v1579_v54  ;;  %v1582_v39 = vld [vmem:[%s2624_s13 + $0x38] sm:$0xff] }
 0xb58   : > { %v1434_v56 = vsel %vm513_vm0, %v1429_v55, 0.0 }
 0xb59   : > { %1435 = vadd.xlane.f32.xlu0 %v1434_v56  ;;  %1491 = vmatpush.msra.mxu0 %v1830_v63  ;;  %v1581_v56 = vld [vmem:[%s2624_s13 + $0x30] sm:$0xff] }
 0xb5b   : > { %1492 = vmatpush.msra.mxu0 %v1829_v0  ;;  %v1578_v0 = vld [vmem:[%s2624_s13 + $0x18] sm:$0xff] }
 0xb5d   : > { %1656 = vmatpush.msrb.mxu0 %v1589_v50 }
 0xb5f   : > { %1657 = vmatpush.msrb.mxu0 %v1585_v53 }
 0xb61   : > { %1658 = vmatpush.msrb.mxu0 %v1581_v56 }
 0xbcc   : > { %v1436_v57 = vpop.xlane.xlu0 %1435 }
 0xbcd   : > { %v1437_v58 = vmul.f32 %v1436_v57, %v2278_v29  ;;  %v1575_v57 = vld [vmem:[%s2624_s13] sm:$0xff] }
 0xbce   : > { %1619 = vmatpush.msra.mxu1 %v1575_v57 }
 0xbcf   : > { %v1438_v59 = vsub.f32 %v1429_v55, %v1437_v58  ;;  %v1580_v55 = vld [vmem:[%s2624_s13 + $0x28] sm:$0xff] }
 0xbd0   : > { %v1576_v58 = vld [vmem:[%s2624_s13 + $0x8] sm:$0xff]  ;;  %1638 = vmatpush.msra.mxu3 %v1580_v55 }
 0xbd1   : > { %v1439_v60 = vmul.f32 %v1438_v59, %v1438_v59 }
 0xbd2   : > { %1639 = vmatpush.msra.mxu3 %v1576_v58 }
 0xbd3   : > { %v1440_v61 = vsel %vm513_vm0, %v1439_v60, 0.0  ;;  %v1590_v60 = vld [vmem:[%s2624_s13 + $0x78] sm:$0xff] }
 0xbd4   : > { %1441 = vadd.xlane.f32.xlu1 %v1440_v61  ;;  %v1586_v61 = vld [vmem:[%s2624_s13 + $0x58] sm:$0xff]  ;;  %1676 = vmatpush.msrb.mxu1 %v1590_v60 }
 0xbd6   : > { %1677 = vmatpush.msrb.mxu1 %v1586_v61 }
 0xbd8   : > { %1678 = vmatpush.msrb.mxu1 %v1582_v39 }
 0xbda   : > { %1679 = vmatpush.msrb.mxu1 %v1578_v0 }
 0xc47   : > { %v1442_v5 = vpop.xlane.xlu1 %1441 }
 0xc48   : > { %v1443_v6 = vmul.f32 %v1442_v5, %v2278_v29 }
 0xc4a   : > { %v1444_v8 = vadd.f32 1e-05, %v1443_v6 }
 0xc4c   : > { %1967 = vrsqrt.f32 %v1444_v8  ;;  %vm1451_vm10 = vweird.f32 %v1444_v8 }
 0xc52   : > { %v1968_v13 = vpop.eup %1967 }
 0xc53   : > { %v1446_v16 = vmul.f32 %v1968_v13, %v1444_v8  ;;  %vm1452_vm9 = vweird.f32 %v1968_v13 }
 0xc54   : > { %vm1453_vm11 = vmor %vm1451_vm10, %vm1452_vm9 }
 0xc55   : > { %v1447_v18 = vmul.f32 %v1968_v13, %v1446_v16  ;;  %v1593_v16 = vperm.slane %v1591_v14, 0 }
 0xc57   : > { %v1448_v20 = vmul.f32 0.5, %v1447_v18 }
 0xc59   : > { %v1449_v22 = vsub.f32 1.5, %v1448_v20 }
 0xc5b   : > { %v1450_v15 = vmul.f32 %v1968_v13, %v1449_v22  ;;  %v1594_v22 = vperm.slane %v1591_v14, 1 }
 0xc5d   : > { %v1454_v25 = vsel %vm1453_vm11, %v1968_v13, %v1450_v15 }
 0xc5e   : > { %v1455_v26 = vmul.f32 %v1454_v25, %v1438_v59  ;;  %v1577_v59 = vld [vmem:[%s2624_s13 + $0x10] sm:$0xff] }
 0xc5f   : > { %1659 = vmatpush.msrb.mxu0 %v1577_v59 }
 0xc60   : > { %v1459_v28 = vmul.f32 %v1923_v24, %v1455_v26 }
 0xc62   : > { %v1463_v30 = vadd.f32 %v1924_v27, %v1459_v28 }
 0xc64   : > { %1834 = vmatmul.msk.f32.vlgmr.msra.gmra.mxu0 %vm513_vm0, %v1463_v30 }
 0xce1   : > { %v1494_v34 = vpop.f32.mrf.mxu0 }
 0xce2   : > { %v1495_v35 = vadd.f32 %v1925_v4, %v1494_v34 }
 0xce4   : > { %v1497_v36 = vmax.f32 %v1495_v35, 0.0 }
 0xce6   : > { %1536 = vmatmul.f32.vlgmr.msra.gmra.mxu2 %v1497_v36 }
 0xd69   : > { %v1537_v38 = vpop.f32.mrf.mxu2 }
 0xd6a   : > { %v1538_v40 = vadd.f32 %v1926_v37, %v1537_v38 }
 0xd6c   : > { %v1540_v41 = vadd.f32 %v1538_v40, %v1463_v30 }
 0xd6e   : > { %v1545_v42 = vsel %vm513_vm0, %v1540_v41, 0.0 }
 0xd6f   : > { %1546 = vadd.xlane.f32.xlu0 %v1545_v42 }
 0xde2   : > { %v1547_v43 = vpop.xlane.xlu0 %1546 }
 0xde3   : > { %v1548_v44 = vmul.f32 %v1547_v43, %v2278_v29 }
 0xde5   : > { %v1549_v45 = vsub.f32 %v1540_v41, %v1548_v44 }
 0xde7   : > { %v1550_v46 = vmul.f32 %v1549_v45, %v1549_v45 }
 0xde9   : > { %v1551_v47 = vsel %vm513_vm0, %v1550_v46, 0.0 }
 0xdea   : > { %1552 = vadd.xlane.f32.xlu2 %v1551_v47 }
 0xe5d   : > { %v1553_v62 = vpop.xlane.xlu2 %1552 }
 0xe5e   : > { %v1554_v63 = vmul.f32 %v1553_v62, %v2278_v29  ;;  %v1927_v29 = vld [vmem:[%s2622_s11 + $0x1] ss:$0 sm:$0xff] }
 0xe60   : > { %v1555_v1 = vadd.f32 1e-05, %v1554_v63 }
 0xe62   : > { %1969 = vrsqrt.f32 %v1555_v1  ;;  %vm1562_vm13 = vweird.f32 %v1555_v1 }
 0xe68   : > { %v1970_v2 = vpop.eup %1969 }
 0xe69   : > { %v1557_v3 = vmul.f32 %v1970_v2, %v1555_v1  ;;  %vm1563_vm12 = vweird.f32 %v1970_v2 }
 0xe6a   : > { %vm1564_vm14 = vmor %vm1562_vm13, %vm1563_vm12 }
 0xe6b   : > { %v1558_v5 = vmul.f32 %v1970_v2, %v1557_v3 }
 0xe6d   : > { %v1559_v6 = vmul.f32 0.5, %v1558_v5 }
 0xe6f   : > { %v1560_v7 = vsub.f32 1.5, %v1559_v6 }
 0xe71   : > { %v1561_v8 = vmul.f32 %v1970_v2, %v1560_v7 }
 0xe73   : > { %v1565_v9 = vsel %vm1564_vm14, %v1970_v2, %v1561_v8 }
 0xe74   : > { %v1566_v10 = vmul.f32 %v1565_v9, %v1549_v45 }
 0xe76   : > { %v1570_v12 = vmul.f32 %v1927_v29, %v1566_v10 }
 0xe78   : > { %v1574_v13 = vadd.f32 %v1928_v11, %v1570_v12 }
 0xe7a   : > { %1854 = vmatmul.msk.f32.vlgmr.msra.gmra.mxu1 %vm513_vm0, %v1574_v13  ;;  %1855 = vmatmul.msk.f32.vlgmr.msra.gmra.mxu3 %vm513_vm0, %v1574_v13 }
 0xe7b   : > { %1856 = vmatmul.msk.f32.vlgmr.msrb.gmra.mxu0 %vm513_vm0, %v1574_v13 }
 0xe82   : > { %1857 = vmatmul.msk.f32.vlgmr.msrb.gmra.mxu1 %vm513_vm0, %v1574_v13 }
 0xef7   : > { %v1621_v18 = vpop.f32.mrf.mxu1 }
 0xef8   : > { %v1622_v19 = vadd.f32 %v1621_v18, %v1593_v16  ;;  %v1661_v20 = vpop.f32.mrf.mxu0 }
 0xef9   : > { %v1662_v21 = vadd.f32 %v1661_v20, %v1595_v17 }
 0xefa   : > { %1684 = vst [vmem:[%s498_s26] sm:$0xff] %v1622_v19 }
 0xefb   : > { %1686 = vst [vmem:[%s498_s26 + $0x10] sm:$0xff] %v1662_v21 }
 0xefd   : > { %v1641_v15 = vpop.f32.mrf.mxu3 }
 0xefe   : > { %v1642_v24 = vadd.f32 %v1641_v15, %v1594_v22 }
 0xeff   : > { %v1681_v25 = vpop.f32.mrf.mxu1 }
 0xf00   : > { %1685 = vst [vmem:[%s498_s26 + $0x8] sm:$0xff] %v1642_v24  ;;  %v1682_v26 = vadd.f32 %v1681_v25, %v1596_v23 }
 0xf02   : > { %1687 = vst [vmem:[%s498_s26 + $0x18] sm:$0xff] %v1682_v26 }
 0xf03   : > { %1998 = shalt.err (!%p1995_p3)
}
 0xf04   : > { %1864 = dma.vmem_to_hbm [thread:$0]  (%p2165_p5), %s1703_s1, 512, %s1705_s17, %s1689_s22  }
 0xf05 PF: > { %p1870_p4 = scmp.ge.s32.totalorder %s2033_s21, 2  ;;  %s1716_s23 = sand.u32 1, %s2021_s18  }
 0xf06   : > { %s1717_s26 = scalar_lea.sflag [#allocation3], %s1716_s23 }
 0xf07   : > { %p1867_p7 = pnand %p1870_p4, %p2169_p6 }
 0xf09   : > { %p1868_p8 = pneg %p1867_p7 }
 0xf0b   : > { %2016 = dma.done.wait (%p1868_p8), %s1717_s26, 512  }
 0xf0c   : > { %2018 = vsyncadd (%p1868_p8), %s1717_s26, 4294966784  ;;  %s2663_s21 = sld [smem:[#allocation6_spill]]  ;;  %s2666_s18 = smov %s2025_s19 }
 0xf0d   : > { %s2664_s0 = sld [smem:[#allocation5_spill]] }
 0xf0e   : > { %s2665_s20 = sld [smem:[#allocation7_spill]] }
 0xf12   : > { %p25_p9 = scmp.ge.s32.totalorder %s2663_s21, 4  }
 0xf13   : > { %s2667_s19 = smov %s2664_s0 }
 0xf14   :  { %27 = sbr.rel (!%p25_p9) target bundleno = 6 (0x6), region = 129 }
 0xf19   :  { %1723 = vsyncpa [#allocation3], 1 }
 0xf1a   :  { %1725 = vsyncpa [#allocation3 + $0x1], 1 }

</bundles_post_ra>
